<compile_context>
chip_gen: v5e
topology: v5e:2x2
jax: 0.10.0
libtpu: 0.0.40
codegen_flags: <defaults>
</compile_context>

<pallas_src>
import functools
from math import exp

import numpy as np
import jax
import jax.numpy as jnp
from jax import lax
from jax.experimental import pallas as pl
from jax.experimental.pallas import tpu as pltpu

FILTER_SIZE = 5
# halo rows needed per strip: gauss(2) + sobel(1) + directional(1) = 4,
# rounded up to 8 so every output row-slice is sublane-aligned (free).
HALO = 8
TAN_22_5 = 0.4142135623730951            # tan(pi/8): octant boundary


# deterministic "gaussian(5, std=1.0)" exactly as the torch helper builds it
def _gaussian(n, std):
    g = np.array([exp(-((x - n // 2) ** 2) / float(2 * std ** 2)) for x in range(n)],
                 dtype=np.float64)
    return (g / g.sum()).astype(np.float32)


_G = _gaussian(FILTER_SIZE, 1.0)
G0, G1, G2 = float(_G[0]), float(_G[1]), float(_G[2])   # symmetric taps


def _round_up(x, m):
    return -(-x // m) * m


def _canny_kernel(thr_ref, strips_ref,
                  blurred_ref, gmag_ref, gori_ref, thin_ref, thr_out_ref, early_ref,
                  *, true_h, true_w, strip_rows):
    thr = thr_ref[0]
    Hb = strip_rows + 2 * HALO
    Wp = strips_ref.shape[-1]
    s = pl.program_id(0)

    # Single validity plane (replaces v2's per-shift mask+select): rows/cols
    # outside the true image are re-zeroed once per conv stage, which is
    # exactly the zero-"same"-padding the PyTorch convs apply.
    row_img = s * strip_rows - HALO + lax.broadcasted_iota(jnp.int32, (Hb, Wp), 0)
    col_img = lax.broadcasted_iota(jnp.int32, (Hb, Wp), 1)
    valid = (row_img >= 0) & (row_img < true_h) & (col_img < true_w)

    # result[i, j] = x[i + d, j] / x[i, j + d].  Wrap-around only ever lands in
    # rows/cols that are zero (clean pad) or never read downstream.
    def sh_r(x, d):
        return pltpu.roll(x, shift=(-d) % Hb, axis=0)

    def sh_c(x, d):
        return pltpu.roll(x, shift=(-d) % Wp, axis=1)

    def gauss(x, sh):
        # symmetric 5-tap: 3 multiplies instead of 5
        return G2 * x + G1 * (sh(x, -1) + sh(x, 1)) + G0 * (sh(x, -2) + sh(x, 2))

    out_rows = slice(HALO, HALO + strip_rows)

    grad_mag = jnp.zeros((Hb, Wp), jnp.float32)
    sum_x = jnp.zeros((Hb, Wp), jnp.float32)
    sum_y = jnp.zeros((Hb, Wp), jnp.float32)
    for c in range(3):
        ch = strips_ref[0, c]
        bl = gauss(gauss(ch, sh_c), sh_r)              # separable gaussian blur
        bl = jnp.where(valid, bl, 0.0)                 # single re-zero per stage
        blurred_ref[c] = bl[out_rows, :]

        # Sobel: the two column shifts of bl feed BOTH the x and y pass.
        bl_l = sh_c(bl, -1)
        bl_r = sh_c(bl, 1)
        col_diff = bl_l - bl_r                         # row-smooth  -> gx
        col_smooth = bl_l + 2.0 * bl + bl_r            # row-diff    -> gy
        gx = sh_r(col_diff, -1) + 2.0 * col_diff + sh_r(col_diff, 1)
        gy = sh_r(col_smooth, -1) - sh_r(col_smooth, 1)
        grad_mag = grad_mag + jnp.sqrt(gx * gx + gy * gy)
        sum_x = sum_x + gx
        sum_y = sum_y + gy

    grad_mag = jnp.where(valid, grad_mag, 0.0)         # clean once before directional

    # Orientation: octant classification with compares/selects only (no divide,
    # no atan2 polynomial).  Differs from round(atan2*180/3.14159/45) only on
    # the measure-zero 22.5-degree boundary set.
    ax = jnp.abs(sum_x)
    ay = jnp.abs(sum_y)
    near_x = ay <= TAN_22_5 * ax
    near_y = ax <= TAN_22_5 * ay
    sx_nonneg = sum_x >= 0.0
    sy_nonneg = sum_y >= 0.0
    m_mag = jnp.where(near_x, jnp.where(sx_nonneg, 0, 4),
                      jnp.where(near_y, 2, jnp.where(sx_nonneg, 1, 3))).astype(jnp.int32)
    m = jnp.where(sy_nonneg, m_mag, -m_mag)            # round(theta/45deg) in [-4, 4]
    k = m + 4                                          # round((deg+180)/45) in [0, 8]
    grad_ori = k.astype(jnp.float32) * 45.0
    idx_pos = jnp.where(k == 8, 0, k)                  # (ori/45) % 8 ; idx_neg = (idx_pos+4)%8

    # directional_filter + per-pixel channel gather: each "filter" is just
    # grad_mag minus a shifted neighbour, so select the neighbour per pixel and
    # subtract once.  Row shifts hoisted and reused across the three dx values.
    gm_u = sh_r(grad_mag, -1)
    gm_d = sh_r(grad_mag, 1)
    nb_pos = jnp.zeros((Hb, Wp), jnp.float32)
    nb_neg = jnp.zeros((Hb, Wp), jnp.float32)

    def pick(kd, nbr, nb_pos, nb_neg):
        nb_pos = jnp.where(idx_pos == kd, nbr, nb_pos)
        nb_neg = jnp.where(idx_pos == (kd + 4) % 8, nbr, nb_neg)
        return nb_pos, nb_neg

    nb_pos, nb_neg = pick(0, sh_c(grad_mag, 1), nb_pos, nb_neg)   # ( 0, +1)
    nb_pos, nb_neg = pick(1, sh_c(gm_d, 1), nb_pos, nb_neg)       # (+1, +1)
    nb_pos, nb_neg = pick(2, gm_d, nb_pos, nb_neg)                # (+1,  0)
    nb_pos, nb_neg = pick(3, sh_c(gm_d, -1), nb_pos, nb_neg)      # (+1, -1)
    nb_pos, nb_neg = pick(4, sh_c(grad_mag, -1), nb_pos, nb_neg)  # ( 0, -1)
    nb_pos, nb_neg = pick(5, sh_c(gm_u, -1), nb_pos, nb_neg)      # (-1, -1)
    nb_pos, nb_neg = pick(6, gm_u, nb_pos, nb_neg)                # (-1,  0)
    nb_pos, nb_neg = pick(7, sh_c(gm_u, 1), nb_pos, nb_neg)       # (-1, +1)

    is_max = jnp.minimum(grad_mag - nb_pos, grad_mag - nb_neg) > 0.0
    thin = jnp.where(is_max, grad_mag, 0.0)

    gm_c = grad_mag[out_rows, :]
    thin_c = thin[out_rows, :]
    gmag_ref[...] = gm_c
    gori_ref[...] = grad_ori[out_rows, :]
    thin_ref[...] = thin_c
    thr_out_ref[...] = jnp.where(thin_c < thr, 0.0, thin_c)
    early_ref[...] = jnp.where(gm_c < thr, 0.0, gm_c)


def _vmem_need_bytes(strip_rows, wp):
    halo_plane = (strip_rows + 2 * HALO) * wp * 4
    out_plane = strip_rows * wp * 4
    # double-buffered input strip (3 ch) + double-buffered outputs (3 blurred +
    # 5 maps) + ~20 live full-plane temporaries + slack for Mosaic scratch.
    return 2 * 3 * halo_plane + 2 * 8 * out_plane + 20 * halo_plane + (2 << 20)


def canny_forward(img, threshold, *, max_strip_rows=128):
    """img: [1, 3, H, W] float32, threshold: scalar.  Returns the 6 CannyNet outputs."""
    img = jnp.asarray(img, jnp.float32)
    B, C, H, W = img.shape
    assert B == 1 and C == 3, "CannyNet semantics assume a single RGB image"

    # Lane-dense width with >=4 genuinely-zero pad cols so rolls wrap into zeros.
    Wp = _round_up(W + 4, 128)

    try:
        vmem_cap = int(pltpu.get_tpu_info().vmem_capacity_bytes)
    except Exception:
        vmem_cap = 64 << 20                      # conservative fallback (v7x per-TC VMEM)
    usable = vmem_cap - (8 << 20)

    # Largest strip that fits the per-core VMEM; shrink automatically instead of OOMing.
    S = min(_round_up(max_strip_rows, 8), _round_up(H, 8))
    while _vmem_need_bytes(S, Wp) > usable and S > 8:
        S = max(8, (S // 2 + 7) // 8 * 8)

    num_strips = -(-H // S)
    Ho = num_strips * S

    # Zero pad: HALO rows above, >=HALO rows below, >=4 cols right, then cut
    # overlapping halo'd strips (strip s covers image rows [s*S-HALO, s*S+S+HALO)).
    img_p = jnp.pad(img[0], ((0, 0), (HALO, Ho + HALO - H), (0, Wp - W)))
    strips = jnp.stack(
        [img_p[:, s * S: s * S + S + 2 * HALO, :] for s in range(num_strips)],
        axis=0)                                  # (num_strips, 3, S+2*HALO, Wp)
    # TODO(synk): replace this wrapper-side halo copy with in-kernel
    # make_async_copy from a pl.ANY HBM ref to drop the extra image pass.

    thr = jnp.full((1,), threshold, jnp.float32)

    out_shape = (
        jax.ShapeDtypeStruct((3, Ho, Wp), jnp.float32),   # blurred_img (squeezed)
        jax.ShapeDtypeStruct((Ho, Wp), jnp.float32),      # grad_mag
        jax.ShapeDtypeStruct((Ho, Wp), jnp.float32),      # grad_orientation
        jax.ShapeDtypeStruct((Ho, Wp), jnp.float32),      # thin_edges
        jax.ShapeDtypeStruct((Ho, Wp), jnp.float32),      # thresholded
        jax.ShapeDtypeStruct((Ho, Wp), jnp.float32),      # early_threshold
    )

    vmem_limit = int(min(usable, max(int(_vmem_need_bytes(S, Wp) * 1.25), 32 << 20)))

    map_spec = pl.BlockSpec((S, Wp), lambda s: (s, 0))
    outs = pl.pallas_call(
        functools.partial(_canny_kernel, true_h=H, true_w=W, strip_rows=S),
        grid=(num_strips,),
        out_shape=out_shape,
        in_specs=[
            pl.BlockSpec(memory_space=pltpu.MemorySpace.SMEM),               # threshold
            pl.BlockSpec((1, 3, S + 2 * HALO, Wp), lambda s: (s, 0, 0, 0)),  # halo'd strip
        ],
        out_specs=(
            pl.BlockSpec((3, S, Wp), lambda s: (0, s, 0)),
            map_spec, map_spec, map_spec, map_spec, map_spec,
        ),
        compiler_params=pltpu.CompilerParams(
            dimension_semantics=("parallel",),
            vmem_limit_bytes=vmem_limit),
    )(thr, strips)

    blurred_p, gmag_p, gori_p, thin_p, thr_p, early_p = outs
    blurred = blurred_p[:, :H, :W][None]                 # [1, 3, H, W]
    crop = lambda t: t[:H, :W][None, None]               # [1, 1, H, W]
    return (blurred, crop(gmag_p), crop(gori_p), crop(thin_p), crop(thr_p), crop(early_p))


if __name__ == "__main__":
    key = jax.random.PRNGKey(0)
    H = W = 16
    img = jax.random.uniform(key, (1, 3, H, W), dtype=jnp.float32)
    threshold = 1.0

    outs = canny_forward(img, threshold)
    outs = jax.block_until_ready(outs)

    blurred, grad_mag, grad_ori, thin, thresholded, early = outs
    assert blurred.shape == (1, 3, H, W)
    for t in (grad_mag, grad_ori, thin, thresholded, early):
        assert t.shape == (1, 1, H, W)
        assert t.dtype == jnp.float32

    print("KERNEL_OK")
</pallas_src>

<mosaic_0001>
module attributes {stable_mosaic.version = 11 : i64} {
  func.func @_canny_kernel(%arg0: i32, %arg1: memref<1xf32, #tpu.memory_space<smem>>, %arg2: memref<1x3x32x128xf32, #tpu.memory_space<vmem>>, %arg3: memref<3x16x128xf32, #tpu.memory_space<vmem>>, %arg4: memref<16x128xf32, #tpu.memory_space<vmem>>, %arg5: memref<16x128xf32, #tpu.memory_space<vmem>>, %arg6: memref<16x128xf32, #tpu.memory_space<vmem>>, %arg7: memref<16x128xf32, #tpu.memory_space<vmem>>, %arg8: memref<16x128xf32, #tpu.memory_space<vmem>>) attributes {dimension_semantics = [#tpu.dimension_semantics<parallel>], iteration_bounds = array<i64: 1>, scalar_prefetch = 0 : i64, scratch_operands = 0 : i64, tpu.core_type = #tpu.core_type<tc>, window_params = [{transform_indices = @transform_0, window_bounds = array<i64: 1>}, {transform_indices = @transform_1, window_bounds = array<i64: 1, 3, 32, 128>}, {transform_indices = @transform_2, window_bounds = array<i64: 3, 16, 128>}, {transform_indices = @transform_3, window_bounds = array<i64: 16, 128>}, {transform_indices = @transform_4, window_bounds = array<i64: 16, 128>}, {transform_indices = @transform_5, window_bounds = array<i64: 16, 128>}, {transform_indices = @transform_6, window_bounds = array<i64: 16, 128>}, {transform_indices = @transform_7, window_bounds = array<i64: 16, 128>}]} {
    %c0 = arith.constant 0 : index
    %0 = memref.load %arg1[%c0] : memref<1xf32, #tpu.memory_space<smem>>
    %c16_i32 = arith.constant 16 : i32
    %1 = arith.muli %arg0, %c16_i32 : i32
    %c8_i32 = arith.constant 8 : i32
    %2 = arith.subi %1, %c8_i32 : i32
    %3 = tpu.iota {dimensions = array<i32: 0>} : vector<32x128xi32>
    %4 = vector.broadcast %2 : i32 to vector<32x128xi32>
    %5 = arith.addi %4, %3 : vector<32x128xi32>
    %6 = tpu.iota {dimensions = array<i32: 1>} : vector<32x128xi32>
    %c0_i32 = arith.constant 0 : i32
    %7 = vector.broadcast %c0_i32 : i32 to vector<32x128xi32>
    %8 = arith.cmpi sge, %5, %7 : vector<32x128xi32>
    %c16_i32_0 = arith.constant 16 : i32
    %9 = vector.broadcast %c16_i32_0 : i32 to vector<32x128xi32>
    %10 = arith.cmpi slt, %5, %9 : vector<32x128xi32>
    %11 = arith.andi %8, %10 : vector<32x128xi1>
    %c16_i32_1 = arith.constant 16 : i32
    %12 = vector.broadcast %c16_i32_1 : i32 to vector<32x128xi32>
    %13 = arith.cmpi slt, %6, %12 : vector<32x128xi32>
    %14 = arith.andi %11, %13 : vector<32x128xi1>
    %cst = arith.constant 0.000000e+00 : f32
    %15 = vector.broadcast %cst : f32 to vector<32x128xf32>
    %cst_2 = arith.constant 0.000000e+00 : f32
    %16 = vector.broadcast %cst_2 : f32 to vector<32x128xf32>
    %cst_3 = arith.constant 0.000000e+00 : f32
    %17 = vector.broadcast %cst_3 : f32 to vector<32x128xf32>
    %c0_4 = arith.constant 0 : index
    %c0_5 = arith.constant 0 : index
    %c0_6 = arith.constant 0 : index
    %c0_7 = arith.constant 0 : index
    %18 = vector.load %arg2[%c0_4, %c0_5, %c0_6, %c0_7] : memref<1x3x32x128xf32, #tpu.memory_space<vmem>>, vector<1x1x32x128xf32>
    %19 = vector.shape_cast %18 : vector<1x1x32x128xf32> to vector<32x128xf32>
    %cst_8 = arith.constant 0.402619958 : f32
    %20 = vector.broadcast %cst_8 : f32 to vector<32x128xf32>
    %21 = arith.mulf %20, %19 : vector<32x128xf32>
    %c1_i32 = arith.constant 1 : i32
    %22 = tpu.dynamic_rotate %19 by %c1_i32 dim 1 : vector<32x128xf32>, i32 -> vector<32x128xf32>
    %c127_i32 = arith.constant 127 : i32
    %23 = tpu.dynamic_rotate %19 by %c127_i32 dim 1 : vector<32x128xf32>, i32 -> vector<32x128xf32>
    %24 = arith.addf %22, %23 : vector<32x128xf32>
    %cst_9 = arith.constant 0.244201347 : f32
    %25 = vector.broadcast %cst_9 : f32 to vector<32x128xf32>
    %26 = arith.mulf %25, %24 : vector<32x128xf32>
    %27 = arith.addf %21, %26 : vector<32x128xf32>
    %c2_i32 = arith.constant 2 : i32
    %28 = tpu.dynamic_rotate %19 by %c2_i32 dim 1 : vector<32x128xf32>, i32 -> vector<32x128xf32>
    %c126_i32 = arith.constant 126 : i32
    %29 = tpu.dynamic_rotate %19 by %c126_i32 dim 1 : vector<32x128xf32>, i32 -> vector<32x128xf32>
    %30 = arith.addf %28, %29 : vector<32x128xf32>
    %cst_10 = arith.constant 0.054488685 : f32
    %31 = vector.broadcast %cst_10 : f32 to vector<32x128xf32>
    %32 = arith.mulf %31, %30 : vector<32x128xf32>
    %33 = arith.addf %27, %32 : vector<32x128xf32>
    %cst_11 = arith.constant 0.402619958 : f32
    %34 = vector.broadcast %cst_11 : f32 to vector<32x128xf32>
    %35 = arith.mulf %34, %33 : vector<32x128xf32>
    %c1_i32_12 = arith.constant 1 : i32
    %36 = tpu.dynamic_rotate %33 by %c1_i32_12 dim 0 : vector<32x128xf32>, i32 -> vector<32x128xf32>
    %c31_i32 = arith.constant 31 : i32
    %37 = tpu.dynamic_rotate %33 by %c31_i32 dim 0 : vector<32x128xf32>, i32 -> vector<32x128xf32>
    %38 = arith.addf %36, %37 : vector<32x128xf32>
    %cst_13 = arith.constant 0.244201347 : f32
    %39 = vector.broadcast %cst_13 : f32 to vector<32x128xf32>
    %40 = arith.mulf %39, %38 : vector<32x128xf32>
    %41 = arith.addf %35, %40 : vector<32x128xf32>
    %c2_i32_14 = arith.constant 2 : i32
    %42 = tpu.dynamic_rotate %33 by %c2_i32_14 dim 0 : vector<32x128xf32>, i32 -> vector<32x128xf32>
    %c30_i32 = arith.constant 30 : i32
    %43 = tpu.dynamic_rotate %33 by %c30_i32 dim 0 : vector<32x128xf32>, i32 -> vector<32x128xf32>
    %44 = arith.addf %42, %43 : vector<32x128xf32>
    %cst_15 = arith.constant 0.054488685 : f32
    %45 = vector.broadcast %cst_15 : f32 to vector<32x128xf32>
    %46 = arith.mulf %45, %44 : vector<32x128xf32>
    %47 = arith.addf %41, %46 : vector<32x128xf32>
    %cst_16 = arith.constant 0.000000e+00 : f32
    %48 = vector.broadcast %cst_16 : f32 to vector<32x128xf32>
    %49 = arith.select %14, %47, %48 : vector<32x128xi1>, vector<32x128xf32>
    %50 = vector.extract_strided_slice %49 {offsets = [8, 0], sizes = [16, 128], strides = [1, 1]} : vector<32x128xf32> to vector<16x128xf32>
    %c0_17 = arith.constant 0 : index
    %c0_18 = arith.constant 0 : index
    %c0_19 = arith.constant 0 : index
    %51 = vector.load %arg3[%c0_17, %c0_18, %c0_19] : memref<3x16x128xf32, #tpu.memory_space<vmem>>, vector<1x16x128xf32>
    %52 = vector.shape_cast %51 : vector<1x16x128xf32> to vector<16x128xf32>
    %53 = vector.shape_cast %50 : vector<16x128xf32> to vector<1x16x128xf32>
    tpu.vector_store %arg3[%c0_17, %c0_18, %c0_19], %53 {strides = array<i32>} : memref<3x16x128xf32, #tpu.memory_space<vmem>>, vector<1x16x128xf32>,
    %c1_i32_20 = arith.constant 1 : i32
    %54 = tpu.dynamic_rotate %49 by %c1_i32_20 dim 1 : vector<32x128xf32>, i32 -> vector<32x128xf32>
    %c127_i32_21 = arith.constant 127 : i32
    %55 = tpu.dynamic_rotate %49 by %c127_i32_21 dim 1 : vector<32x128xf32>, i32 -> vector<32x128xf32>
    %56 = arith.subf %54, %55 : vector<32x128xf32>
    %cst_22 = arith.constant 2.000000e+00 : f32
    %57 = vector.broadcast %cst_22 : f32 to vector<32x128xf32>
    %58 = arith.mulf %57, %49 : vector<32x128xf32>
    %59 = arith.addf %54, %58 : vector<32x128xf32>
    %60 = arith.addf %59, %55 : vector<32x128xf32>
    %c1_i32_23 = arith.constant 1 : i32
    %61 = tpu.dynamic_rotate %56 by %c1_i32_23 dim 0 : vector<32x128xf32>, i32 -> vector<32x128xf32>
    %cst_24 = arith.constant 2.000000e+00 : f32
    %62 = vector.broadcast %cst_24 : f32 to vector<32x128xf32>
    %63 = arith.mulf %62, %56 : vector<32x128xf32>
    %64 = arith.addf %61, %63 : vector<32x128xf32>
    %c31_i32_25 = arith.constant 31 : i32
    %65 = tpu.dynamic_rotate %56 by %c31_i32_25 dim 0 : vector<32x128xf32>, i32 -> vector<32x128xf32>
    %66 = arith.addf %64, %65 : vector<32x128xf32>
    %c1_i32_26 = arith.constant 1 : i32
    %67 = tpu.dynamic_rotate %60 by %c1_i32_26 dim 0 : vector<32x128xf32>, i32 -> vector<32x128xf32>
    %c31_i32_27 = arith.constant 31 : i32
    %68 = tpu.dynamic_rotate %60 by %c31_i32_27 dim 0 : vector<32x128xf32>, i32 -> vector<32x128xf32>
    %69 = arith.subf %67, %68 : vector<32x128xf32>
    %70 = arith.mulf %66, %66 : vector<32x128xf32>
    %71 = arith.mulf %69, %69 : vector<32x128xf32>
    %72 = arith.addf %70, %71 : vector<32x128xf32>
    %73 = math.sqrt %72 : vector<32x128xf32>
    %74 = arith.addf %15, %73 : vector<32x128xf32>
    %75 = arith.addf %16, %66 : vector<32x128xf32>
    %76 = arith.addf %17, %69 : vector<32x128xf32>
    %c0_28 = arith.constant 0 : index
    %c1 = arith.constant 1 : index
    %c0_29 = arith.constant 0 : index
    %c0_30 = arith.constant 0 : index
    %77 = vector.load %arg2[%c0_28, %c1, %c0_29, %c0_30] : memref<1x3x32x128xf32, #tpu.memory_space<vmem>>, vector<1x1x32x128xf32>
    %78 = vector.shape_cast %77 : vector<1x1x32x128xf32> to vector<32x128xf32>
    %cst_31 = arith.constant 0.402619958 : f32
    %79 = vector.broadcast %cst_31 : f32 to vector<32x128xf32>
    %80 = arith.mulf %79, %78 : vector<32x128xf32>
    %c1_i32_32 = arith.constant 1 : i32
    %81 = tpu.dynamic_rotate %78 by %c1_i32_32 dim 1 : vector<32x128xf32>, i32 -> vector<32x128xf32>
    %c127_i32_33 = arith.constant 127 : i32
    %82 = tpu.dynamic_rotate %78 by %c127_i32_33 dim 1 : vector<32x128xf32>, i32 -> vector<32x128xf32>
    %83 = arith.addf %81, %82 : vector<32x128xf32>
    %cst_34 = arith.constant 0.244201347 : f32
    %84 = vector.broadcast %cst_34 : f32 to vector<32x128xf32>
    %85 = arith.mulf %84, %83 : vector<32x128xf32>
    %86 = arith.addf %80, %85 : vector<32x128xf32>
    %c2_i32_35 = arith.constant 2 : i32
    %87 = tpu.dynamic_rotate %78 by %c2_i32_35 dim 1 : vector<32x128xf32>, i32 -> vector<32x128xf32>
    %c126_i32_36 = arith.constant 126 : i32
    %88 = tpu.dynamic_rotate %78 by %c126_i32_36 dim 1 : vector<32x128xf32>, i32 -> vector<32x128xf32>
    %89 = arith.addf %87, %88 : vector<32x128xf32>
    %cst_37 = arith.constant 0.054488685 : f32
    %90 = vector.broadcast %cst_37 : f32 to vector<32x128xf32>
    %91 = arith.mulf %90, %89 : vector<32x128xf32>
    %92 = arith.addf %86, %91 : vector<32x128xf32>
    %cst_38 = arith.constant 0.402619958 : f32
    %93 = vector.broadcast %cst_38 : f32 to vector<32x128xf32>
    %94 = arith.mulf %93, %92 : vector<32x128xf32>
    %c1_i32_39 = arith.constant 1 : i32
    %95 = tpu.dynamic_rotate %92 by %c1_i32_39 dim 0 : vector<32x128xf32>, i32 -> vector<32x128xf32>
    %c31_i32_40 = arith.constant 31 : i32
    %96 = tpu.dynamic_rotate %92 by %c31_i32_40 dim 0 : vector<32x128xf32>, i32 -> vector<32x128xf32>
    %97 = arith.addf %95, %96 : vector<32x128xf32>
    %cst_41 = arith.constant 0.244201347 : f32
    %98 = vector.broadcast %cst_41 : f32 to vector<32x128xf32>
    %99 = arith.mulf %98, %97 : vector<32x128xf32>
    %100 = arith.addf %94, %99 : vector<32x128xf32>
    %c2_i32_42 = arith.constant 2 : i32
    %101 = tpu.dynamic_rotate %92 by %c2_i32_42 dim 0 : vector<32x128xf32>, i32 -> vector<32x128xf32>
    %c30_i32_43 = arith.constant 30 : i32
    %102 = tpu.dynamic_rotate %92 by %c30_i32_43 dim 0 : vector<32x128xf32>, i32 -> vector<32x128xf32>
    %103 = arith.addf %101, %102 : vector<32x128xf32>
    %cst_44 = arith.constant 0.054488685 : f32
    %104 = vector.broadcast %cst_44 : f32 to vector<32x128xf32>
    %105 = arith.mulf %104, %103 : vector<32x128xf32>
    %106 = arith.addf %100, %105 : vector<32x128xf32>
    %cst_45 = arith.constant 0.000000e+00 : f32
    %107 = vector.broadcast %cst_45 : f32 to vector<32x128xf32>
    %108 = arith.select %14, %106, %107 : vector<32x128xi1>, vector<32x128xf32>
    %109 = vector.extract_strided_slice %108 {offsets = [8, 0], sizes = [16, 128], strides = [1, 1]} : vector<32x128xf32> to vector<16x128xf32>
    %c1_46 = arith.constant 1 : index
    %c0_47 = arith.constant 0 : index
    %c0_48 = arith.constant 0 : index
    %110 = vector.load %arg3[%c1_46, %c0_47, %c0_48] : memref<3x16x128xf32, #tpu.memory_space<vmem>>, vector<1x16x128xf32>
    %111 = vector.shape_cast %110 : vector<1x16x128xf32> to vector<16x128xf32>
    %112 = vector.shape_cast %109 : vector<16x128xf32> to vector<1x16x128xf32>
    tpu.vector_store %arg3[%c1_46, %c0_47, %c0_48], %112 {strides = array<i32>} : memref<3x16x128xf32, #tpu.memory_space<vmem>>, vector<1x16x128xf32>,
    %c1_i32_49 = arith.constant 1 : i32
    %113 = tpu.dynamic_rotate %108 by %c1_i32_49 dim 1 : vector<32x128xf32>, i32 -> vector<32x128xf32>
    %c127_i32_50 = arith.constant 127 : i32
    %114 = tpu.dynamic_rotate %108 by %c127_i32_50 dim 1 : vector<32x128xf32>, i32 -> vector<32x128xf32>
    %115 = arith.subf %113, %114 : vector<32x128xf32>
    %cst_51 = arith.constant 2.000000e+00 : f32
    %116 = vector.broadcast %cst_51 : f32 to vector<32x128xf32>
    %117 = arith.mulf %116, %108 : vector<32x128xf32>
    %118 = arith.addf %113, %117 : vector<32x128xf32>
    %119 = arith.addf %118, %114 : vector<32x128xf32>
    %c1_i32_52 = arith.constant 1 : i32
    %120 = tpu.dynamic_rotate %115 by %c1_i32_52 dim 0 : vector<32x128xf32>, i32 -> vector<32x128xf32>
    %cst_53 = arith.constant 2.000000e+00 : f32
    %121 = vector.broadcast %cst_53 : f32 to vector<32x128xf32>
    %122 = arith.mulf %121, %115 : vector<32x128xf32>
    %123 = arith.addf %120, %122 : vector<32x128xf32>
    %c31_i32_54 = arith.constant 31 : i32
    %124 = tpu.dynamic_rotate %115 by %c31_i32_54 dim 0 : vector<32x128xf32>, i32 -> vector<32x128xf32>
    %125 = arith.addf %123, %124 : vector<32x128xf32>
    %c1_i32_55 = arith.constant 1 : i32
    %126 = tpu.dynamic_rotate %119 by %c1_i32_55 dim 0 : vector<32x128xf32>, i32 -> vector<32x128xf32>
    %c31_i32_56 = arith.constant 31 : i32
    %127 = tpu.dynamic_rotate %119 by %c31_i32_56 dim 0 : vector<32x128xf32>, i32 -> vector<32x128xf32>
    %128 = arith.subf %126, %127 : vector<32x128xf32>
    %129 = arith.mulf %125, %125 : vector<32x128xf32>
    %130 = arith.mulf %128, %128 : vector<32x128xf32>
    %131 = arith.addf %129, %130 : vector<32x128xf32>
    %132 = math.sqrt %131 : vector<32x128xf32>
    %133 = arith.addf %74, %132 : vector<32x128xf32>
    %134 = arith.addf %75, %125 : vector<32x128xf32>
    %135 = arith.addf %76, %128 : vector<32x128xf32>
    %c0_57 = arith.constant 0 : index
    %c2 = arith.constant 2 : index
    %c0_58 = arith.constant 0 : index
    %c0_59 = arith.constant 0 : index
    %136 = vector.load %arg2[%c0_57, %c2, %c0_58, %c0_59] : memref<1x3x32x128xf32, #tpu.memory_space<vmem>>, vector<1x1x32x128xf32>
    %137 = vector.shape_cast %136 : vector<1x1x32x128xf32> to vector<32x128xf32>
    %cst_60 = arith.constant 0.402619958 : f32
    %138 = vector.broadcast %cst_60 : f32 to vector<32x128xf32>
    %139 = arith.mulf %138, %137 : vector<32x128xf32>
    %c1_i32_61 = arith.constant 1 : i32
    %140 = tpu.dynamic_rotate %137 by %c1_i32_61 dim 1 : vector<32x128xf32>, i32 -> vector<32x128xf32>
    %c127_i32_62 = arith.constant 127 : i32
    %141 = tpu.dynamic_rotate %137 by %c127_i32_62 dim 1 : vector<32x128xf32>, i32 -> vector<32x128xf32>
    %142 = arith.addf %140, %141 : vector<32x128xf32>
    %cst_63 = arith.constant 0.244201347 : f32
    %143 = vector.broadcast %cst_63 : f32 to vector<32x128xf32>
    %144 = arith.mulf %143, %142 : vector<32x128xf32>
    %145 = arith.addf %139, %144 : vector<32x128xf32>
    %c2_i32_64 = arith.constant 2 : i32
    %146 = tpu.dynamic_rotate %137 by %c2_i32_64 dim 1 : vector<32x128xf32>, i32 -> vector<32x128xf32>
    %c126_i32_65 = arith.constant 126 : i32
    %147 = tpu.dynamic_rotate %137 by %c126_i32_65 dim 1 : vector<32x128xf32>, i32 -> vector<32x128xf32>
    %148 = arith.addf %146, %147 : vector<32x128xf32>
    %cst_66 = arith.constant 0.054488685 : f32
    %149 = vector.broadcast %cst_66 : f32 to vector<32x128xf32>
    %150 = arith.mulf %149, %148 : vector<32x128xf32>
    %151 = arith.addf %145, %150 : vector<32x128xf32>
    %cst_67 = arith.constant 0.402619958 : f32
    %152 = vector.broadcast %cst_67 : f32 to vector<32x128xf32>
    %153 = arith.mulf %152, %151 : vector<32x128xf32>
    %c1_i32_68 = arith.constant 1 : i32
    %154 = tpu.dynamic_rotate %151 by %c1_i32_68 dim 0 : vector<32x128xf32>, i32 -> vector<32x128xf32>
    %c31_i32_69 = arith.constant 31 : i32
    %155 = tpu.dynamic_rotate %151 by %c31_i32_69 dim 0 : vector<32x128xf32>, i32 -> vector<32x128xf32>
    %156 = arith.addf %154, %155 : vector<32x128xf32>
    %cst_70 = arith.constant 0.244201347 : f32
    %157 = vector.broadcast %cst_70 : f32 to vector<32x128xf32>
    %158 = arith.mulf %157, %156 : vector<32x128xf32>
    %159 = arith.addf %153, %158 : vector<32x128xf32>
    %c2_i32_71 = arith.constant 2 : i32
    %160 = tpu.dynamic_rotate %151 by %c2_i32_71 dim 0 : vector<32x128xf32>, i32 -> vector<32x128xf32>
    %c30_i32_72 = arith.constant 30 : i32
    %161 = tpu.dynamic_rotate %151 by %c30_i32_72 dim 0 : vector<32x128xf32>, i32 -> vector<32x128xf32>
    %162 = arith.addf %160, %161 : vector<32x128xf32>
    %cst_73 = arith.constant 0.054488685 : f32
    %163 = vector.broadcast %cst_73 : f32 to vector<32x128xf32>
    %164 = arith.mulf %163, %162 : vector<32x128xf32>
    %165 = arith.addf %159, %164 : vector<32x128xf32>
    %cst_74 = arith.constant 0.000000e+00 : f32
    %166 = vector.broadcast %cst_74 : f32 to vector<32x128xf32>
    %167 = arith.select %14, %165, %166 : vector<32x128xi1>, vector<32x128xf32>
    %168 = vector.extract_strided_slice %167 {offsets = [8, 0], sizes = [16, 128], strides = [1, 1]} : vector<32x128xf32> to vector<16x128xf32>
    %c2_75 = arith.constant 2 : index
    %c0_76 = arith.constant 0 : index
    %c0_77 = arith.constant 0 : index
    %169 = vector.load %arg3[%c2_75, %c0_76, %c0_77] : memref<3x16x128xf32, #tpu.memory_space<vmem>>, vector<1x16x128xf32>
    %170 = vector.shape_cast %169 : vector<1x16x128xf32> to vector<16x128xf32>
    %171 = vector.shape_cast %168 : vector<16x128xf32> to vector<1x16x128xf32>
    tpu.vector_store %arg3[%c2_75, %c0_76, %c0_77], %171 {strides = array<i32>} : memref<3x16x128xf32, #tpu.memory_space<vmem>>, vector<1x16x128xf32>,
    %c1_i32_78 = arith.constant 1 : i32
    %172 = tpu.dynamic_rotate %167 by %c1_i32_78 dim 1 : vector<32x128xf32>, i32 -> vector<32x128xf32>
    %c127_i32_79 = arith.constant 127 : i32
    %173 = tpu.dynamic_rotate %167 by %c127_i32_79 dim 1 : vector<32x128xf32>, i32 -> vector<32x128xf32>
    %174 = arith.subf %172, %173 : vector<32x128xf32>
    %cst_80 = arith.constant 2.000000e+00 : f32
    %175 = vector.broadcast %cst_80 : f32 to vector<32x128xf32>
    %176 = arith.mulf %175, %167 : vector<32x128xf32>
    %177 = arith.addf %172, %176 : vector<32x128xf32>
    %178 = arith.addf %177, %173 : vector<32x128xf32>
    %c1_i32_81 = arith.constant 1 : i32
    %179 = tpu.dynamic_rotate %174 by %c1_i32_81 dim 0 : vector<32x128xf32>, i32 -> vector<32x128xf32>
    %cst_82 = arith.constant 2.000000e+00 : f32
    %180 = vector.broadcast %cst_82 : f32 to vector<32x128xf32>
    %181 = arith.mulf %180, %174 : vector<32x128xf32>
    %182 = arith.addf %179, %181 : vector<32x128xf32>
    %c31_i32_83 = arith.constant 31 : i32
    %183 = tpu.dynamic_rotate %174 by %c31_i32_83 dim 0 : vector<32x128xf32>, i32 -> vector<32x128xf32>
    %184 = arith.addf %182, %183 : vector<32x128xf32>
    %c1_i32_84 = arith.constant 1 : i32
    %185 = tpu.dynamic_rotate %178 by %c1_i32_84 dim 0 : vector<32x128xf32>, i32 -> vector<32x128xf32>
    %c31_i32_85 = arith.constant 31 : i32
    %186 = tpu.dynamic_rotate %178 by %c31_i32_85 dim 0 : vector<32x128xf32>, i32 -> vector<32x128xf32>
    %187 = arith.subf %185, %186 : vector<32x128xf32>
    %188 = arith.mulf %184, %184 : vector<32x128xf32>
    %189 = arith.mulf %187, %187 : vector<32x128xf32>
    %190 = arith.addf %188, %189 : vector<32x128xf32>
    %191 = math.sqrt %190 : vector<32x128xf32>
    %192 = arith.addf %133, %191 : vector<32x128xf32>
    %193 = arith.addf %134, %184 : vector<32x128xf32>
    %194 = arith.addf %135, %187 : vector<32x128xf32>
    %cst_86 = arith.constant 0.000000e+00 : f32
    %195 = vector.broadcast %cst_86 : f32 to vector<32x128xf32>
    %196 = arith.select %14, %192, %195 : vector<32x128xi1>, vector<32x128xf32>
    %197 = math.absf %193 : vector<32x128xf32>
    %198 = math.absf %194 : vector<32x128xf32>
    %cst_87 = arith.constant 0.414213568 : f32
    %199 = vector.broadcast %cst_87 : f32 to vector<32x128xf32>
    %200 = arith.mulf %199, %197 : vector<32x128xf32>
    %201 = arith.cmpf ole, %198, %200 : vector<32x128xf32>
    %cst_88 = arith.constant 0.414213568 : f32
    %202 = vector.broadcast %cst_88 : f32 to vector<32x128xf32>
    %203 = arith.mulf %202, %198 : vector<32x128xf32>
    %204 = arith.cmpf ole, %197, %203 : vector<32x128xf32>
    %cst_89 = arith.constant 0.000000e+00 : f32
    %205 = vector.broadcast %cst_89 : f32 to vector<32x128xf32>
    %206 = arith.cmpf oge, %193, %205 : vector<32x128xf32>
    %cst_90 = arith.constant 0.000000e+00 : f32
    %207 = vector.broadcast %cst_90 : f32 to vector<32x128xf32>
    %208 = arith.cmpf oge, %194, %207 : vector<32x128xf32>
    %c0_i32_91 = arith.constant 0 : i32
    %c4_i32 = arith.constant 4 : i32
    %209 = vector.broadcast %c0_i32_91 : i32 to vector<32x128xi32>
    %210 = vector.broadcast %c4_i32 : i32 to vector<32x128xi32>
    %211 = arith.select %206, %209, %210 : vector<32x128xi1>, vector<32x128xi32>
    %c1_i32_92 = arith.constant 1 : i32
    %c3_i32 = arith.constant 3 : i32
    %212 = vector.broadcast %c1_i32_92 : i32 to vector<32x128xi32>
    %213 = vector.broadcast %c3_i32 : i32 to vector<32x128xi32>
    %214 = arith.select %206, %212, %213 : vector<32x128xi1>, vector<32x128xi32>
    %c2_i32_93 = arith.constant 2 : i32
    %215 = vector.broadcast %c2_i32_93 : i32 to vector<32x128xi32>
    %216 = arith.select %204, %215, %214 : vector<32x128xi1>, vector<32x128xi32>
    %217 = arith.select %201, %211, %216 : vector<32x128xi1>, vector<32x128xi32>
    %c0_i32_94 = arith.constant 0 : i32
    %218 = vector.broadcast %c0_i32_94 : i32 to vector<32x128xi32>
    %219 = arith.subi %218, %217 : vector<32x128xi32>
    %220 = arith.select %208, %217, %219 : vector<32x128xi1>, vector<32x128xi32>
    %c4_i32_95 = arith.constant 4 : i32
    %221 = vector.broadcast %c4_i32_95 : i32 to vector<32x128xi32>
    %222 = arith.addi %220, %221 : vector<32x128xi32>
    %223 = arith.sitofp %222 : vector<32x128xi32> to vector<32x128xf32>
    %cst_96 = arith.constant 4.500000e+01 : f32
    %224 = vector.broadcast %cst_96 : f32 to vector<32x128xf32>
    %225 = arith.mulf %223, %224 : vector<32x128xf32>
    %c8_i32_97 = arith.constant 8 : i32
    %226 = vector.broadcast %c8_i32_97 : i32 to vector<32x128xi32>
    %227 = arith.cmpi eq, %222, %226 : vector<32x128xi32>
    %c0_i32_98 = arith.constant 0 : i32
    %228 = vector.broadcast %c0_i32_98 : i32 to vector<32x128xi32>
    %229 = arith.select %227, %228, %222 : vector<32x128xi1>, vector<32x128xi32>
    %c1_i32_99 = arith.constant 1 : i32
    %230 = tpu.dynamic_rotate %196 by %c1_i32_99 dim 0 : vector<32x128xf32>, i32 -> vector<32x128xf32>
    %c31_i32_100 = arith.constant 31 : i32
    %231 = tpu.dynamic_rotate %196 by %c31_i32_100 dim 0 : vector<32x128xf32>, i32 -> vector<32x128xf32>
    %cst_101 = arith.constant 0.000000e+00 : f32
    %232 = vector.broadcast %cst_101 : f32 to vector<32x128xf32>
    %cst_102 = arith.constant 0.000000e+00 : f32
    %233 = vector.broadcast %cst_102 : f32 to vector<32x128xf32>
    %c127_i32_103 = arith.constant 127 : i32
    %234 = tpu.dynamic_rotate %196 by %c127_i32_103 dim 1 : vector<32x128xf32>, i32 -> vector<32x128xf32>
    %c0_i32_104 = arith.constant 0 : i32
    %235 = vector.broadcast %c0_i32_104 : i32 to vector<32x128xi32>
    %236 = arith.cmpi eq, %229, %235 : vector<32x128xi32>
    %237 = arith.select %236, %234, %232 : vector<32x128xi1>, vector<32x128xf32>
    %c4_i32_105 = arith.constant 4 : i32
    %238 = vector.broadcast %c4_i32_105 : i32 to vector<32x128xi32>
    %239 = arith.cmpi eq, %229, %238 : vector<32x128xi32>
    %240 = arith.select %239, %234, %233 : vector<32x128xi1>, vector<32x128xf32>
    %c127_i32_106 = arith.constant 127 : i32
    %241 = tpu.dynamic_rotate %231 by %c127_i32_106 dim 1 : vector<32x128xf32>, i32 -> vector<32x128xf32>
    %c1_i32_107 = arith.constant 1 : i32
    %242 = vector.broadcast %c1_i32_107 : i32 to vector<32x128xi32>
    %243 = arith.cmpi eq, %229, %242 : vector<32x128xi32>
    %244 = arith.select %243, %241, %237 : vector<32x128xi1>, vector<32x128xf32>
    %c5_i32 = arith.constant 5 : i32
    %245 = vector.broadcast %c5_i32 : i32 to vector<32x128xi32>
    %246 = arith.cmpi eq, %229, %245 : vector<32x128xi32>
    %247 = arith.select %246, %241, %240 : vector<32x128xi1>, vector<32x128xf32>
    %c2_i32_108 = arith.constant 2 : i32
    %248 = vector.broadcast %c2_i32_108 : i32 to vector<32x128xi32>
    %249 = arith.cmpi eq, %229, %248 : vector<32x128xi32>
    %250 = arith.select %249, %231, %244 : vector<32x128xi1>, vector<32x128xf32>
    %c6_i32 = arith.constant 6 : i32
    %251 = vector.broadcast %c6_i32 : i32 to vector<32x128xi32>
    %252 = arith.cmpi eq, %229, %251 : vector<32x128xi32>
    %253 = arith.select %252, %231, %247 : vector<32x128xi1>, vector<32x128xf32>
    %c1_i32_109 = arith.constant 1 : i32
    %254 = tpu.dynamic_rotate %231 by %c1_i32_109 dim 1 : vector<32x128xf32>, i32 -> vector<32x128xf32>
    %c3_i32_110 = arith.constant 3 : i32
    %255 = vector.broadcast %c3_i32_110 : i32 to vector<32x128xi32>
    %256 = arith.cmpi eq, %229, %255 : vector<32x128xi32>
    %257 = arith.select %256, %254, %250 : vector<32x128xi1>, vector<32x128xf32>
    %c7_i32 = arith.constant 7 : i32
    %258 = vector.broadcast %c7_i32 : i32 to vector<32x128xi32>
    %259 = arith.cmpi eq, %229, %258 : vector<32x128xi32>
    %260 = arith.select %259, %254, %253 : vector<32x128xi1>, vector<32x128xf32>
    %c1_i32_111 = arith.constant 1 : i32
    %261 = tpu.dynamic_rotate %196 by %c1_i32_111 dim 1 : vector<32x128xf32>, i32 -> vector<32x128xf32>
    %c4_i32_112 = arith.constant 4 : i32
    %262 = vector.broadcast %c4_i32_112 : i32 to vector<32x128xi32>
    %263 = arith.cmpi eq, %229, %262 : vector<32x128xi32>
    %264 = arith.select %263, %261, %257 : vector<32x128xi1>, vector<32x128xf32>
    %c0_i32_113 = arith.constant 0 : i32
    %265 = vector.broadcast %c0_i32_113 : i32 to vector<32x128xi32>
    %266 = arith.cmpi eq, %229, %265 : vector<32x128xi32>
    %267 = arith.select %266, %261, %260 : vector<32x128xi1>, vector<32x128xf32>
    %c1_i32_114 = arith.constant 1 : i32
    %268 = tpu.dynamic_rotate %230 by %c1_i32_114 dim 1 : vector<32x128xf32>, i32 -> vector<32x128xf32>
    %c5_i32_115 = arith.constant 5 : i32
    %269 = vector.broadcast %c5_i32_115 : i32 to vector<32x128xi32>
    %270 = arith.cmpi eq, %229, %269 : vector<32x128xi32>
    %271 = arith.select %270, %268, %264 : vector<32x128xi1>, vector<32x128xf32>
    %c1_i32_116 = arith.constant 1 : i32
    %272 = vector.broadcast %c1_i32_116 : i32 to vector<32x128xi32>
    %273 = arith.cmpi eq, %229, %272 : vector<32x128xi32>
    %274 = arith.select %273, %268, %267 : vector<32x128xi1>, vector<32x128xf32>
    %c6_i32_117 = arith.constant 6 : i32
    %275 = vector.broadcast %c6_i32_117 : i32 to vector<32x128xi32>
    %276 = arith.cmpi eq, %229, %275 : vector<32x128xi32>
    %277 = arith.select %276, %230, %271 : vector<32x128xi1>, vector<32x128xf32>
    %c2_i32_118 = arith.constant 2 : i32
    %278 = vector.broadcast %c2_i32_118 : i32 to vector<32x128xi32>
    %279 = arith.cmpi eq, %229, %278 : vector<32x128xi32>
    %280 = arith.select %279, %230, %274 : vector<32x128xi1>, vector<32x128xf32>
    %c127_i32_119 = arith.constant 127 : i32
    %281 = tpu.dynamic_rotate %230 by %c127_i32_119 dim 1 : vector<32x128xf32>, i32 -> vector<32x128xf32>
    %c7_i32_120 = arith.constant 7 : i32
    %282 = vector.broadcast %c7_i32_120 : i32 to vector<32x128xi32>
    %283 = arith.cmpi eq, %229, %282 : vector<32x128xi32>
    %284 = arith.select %283, %281, %277 : vector<32x128xi1>, vector<32x128xf32>
    %c3_i32_121 = arith.constant 3 : i32
    %285 = vector.broadcast %c3_i32_121 : i32 to vector<32x128xi32>
    %286 = arith.cmpi eq, %229, %285 : vector<32x128xi32>
    %287 = arith.select %286, %281, %280 : vector<32x128xi1>, vector<32x128xf32>
    %288 = arith.subf %196, %284 : vector<32x128xf32>
    %289 = arith.subf %196, %287 : vector<32x128xf32>
    %290 = arith.minimumf %288, %289 : vector<32x128xf32>
    %cst_122 = arith.constant 0.000000e+00 : f32
    %291 = vector.broadcast %cst_122 : f32 to vector<32x128xf32>
    %292 = arith.cmpf ogt, %290, %291 : vector<32x128xf32>
    %cst_123 = arith.constant 0.000000e+00 : f32
    %293 = vector.broadcast %cst_123 : f32 to vector<32x128xf32>
    %294 = arith.select %292, %196, %293 : vector<32x128xi1>, vector<32x128xf32>
    %295 = vector.extract_strided_slice %196 {offsets = [8, 0], sizes = [16, 128], strides = [1, 1]} : vector<32x128xf32> to vector<16x128xf32>
    %296 = vector.extract_strided_slice %294 {offsets = [8, 0], sizes = [16, 128], strides = [1, 1]} : vector<32x128xf32> to vector<16x128xf32>
    %c0_124 = arith.constant 0 : index
    %c0_125 = arith.constant 0 : index
    %297 = vector.load %arg4[%c0_124, %c0_125] : memref<16x128xf32, #tpu.memory_space<vmem>>, vector<16x128xf32>
    tpu.vector_store %arg4[%c0_124, %c0_125], %295 {strides = array<i32>} : memref<16x128xf32, #tpu.memory_space<vmem>>, vector<16x128xf32>,
    %298 = vector.extract_strided_slice %225 {offsets = [8, 0], sizes = [16, 128], strides = [1, 1]} : vector<32x128xf32> to vector<16x128xf32>
    %c0_126 = arith.constant 0 : index
    %c0_127 = arith.constant 0 : index
    %299 = vector.load %arg5[%c0_126, %c0_127] : memref<16x128xf32, #tpu.memory_space<vmem>>, vector<16x128xf32>
    tpu.vector_store %arg5[%c0_126, %c0_127], %298 {strides = array<i32>} : memref<16x128xf32, #tpu.memory_space<vmem>>, vector<16x128xf32>,
    %c0_128 = arith.constant 0 : index
    %c0_129 = arith.constant 0 : index
    %300 = vector.load %arg6[%c0_128, %c0_129] : memref<16x128xf32, #tpu.memory_space<vmem>>, vector<16x128xf32>
    tpu.vector_store %arg6[%c0_128, %c0_129], %296 {strides = array<i32>} : memref<16x128xf32, #tpu.memory_space<vmem>>, vector<16x128xf32>,
    %301 = vector.broadcast %0 : f32 to vector<16x128xf32>
    %302 = arith.cmpf olt, %296, %301 : vector<16x128xf32>
    %cst_130 = arith.constant 0.000000e+00 : f32
    %303 = vector.broadcast %cst_130 : f32 to vector<16x128xf32>
    %304 = arith.select %302, %303, %296 : vector<16x128xi1>, vector<16x128xf32>
    %c0_131 = arith.constant 0 : index
    %c0_132 = arith.constant 0 : index
    %305 = vector.load %arg7[%c0_131, %c0_132] : memref<16x128xf32, #tpu.memory_space<vmem>>, vector<16x128xf32>
    tpu.vector_store %arg7[%c0_131, %c0_132], %304 {strides = array<i32>} : memref<16x128xf32, #tpu.memory_space<vmem>>, vector<16x128xf32>,
    %306 = vector.broadcast %0 : f32 to vector<16x128xf32>
    %307 = arith.cmpf olt, %295, %306 : vector<16x128xf32>
    %cst_133 = arith.constant 0.000000e+00 : f32
    %308 = vector.broadcast %cst_133 : f32 to vector<16x128xf32>
    %309 = arith.select %307, %308, %295 : vector<16x128xi1>, vector<16x128xf32>
    %c0_134 = arith.constant 0 : index
    %c0_135 = arith.constant 0 : index
    %310 = vector.load %arg8[%c0_134, %c0_135] : memref<16x128xf32, #tpu.memory_space<vmem>>, vector<16x128xf32>
    tpu.vector_store %arg8[%c0_134, %c0_135], %309 {strides = array<i32>} : memref<16x128xf32, #tpu.memory_space<vmem>>, vector<16x128xf32>,
    return
  }
  func.func @transform_0(%arg0: i32) -> i32 {
    %c0_i32 = arith.constant 0 : i32
    %c0_i32_0 = arith.constant 0 : i32
    return %c0_i32 : i32
  }
  func.func @transform_1(%arg0: i32) -> (i32, i32, i32, i32) {
    %c0_i32 = arith.constant 0 : i32
    %c0_i32_0 = arith.constant 0 : i32
    %c0_i32_1 = arith.constant 0 : i32
    %c0_i32_2 = arith.constant 0 : i32
    return %arg0, %c0_i32, %c0_i32_0, %c0_i32_1 : i32, i32, i32, i32
  }
  func.func @transform_2(%arg0: i32) -> (i32, i32, i32) {
    %c0_i32 = arith.constant 0 : i32
    %c0_i32_0 = arith.constant 0 : i32
    %c0_i32_1 = arith.constant 0 : i32
    return %c0_i32, %arg0, %c0_i32_0 : i32, i32, i32
  }
  func.func @transform_3(%arg0: i32) -> (i32, i32) {
    %c0_i32 = arith.constant 0 : i32
    %c0_i32_0 = arith.constant 0 : i32
    return %arg0, %c0_i32 : i32, i32
  }
  func.func @transform_4(%arg0: i32) -> (i32, i32) {
    %c0_i32 = arith.constant 0 : i32
    %c0_i32_0 = arith.constant 0 : i32
    return %arg0, %c0_i32 : i32, i32
  }
  func.func @transform_5(%arg0: i32) -> (i32, i32) {
    %c0_i32 = arith.constant 0 : i32
    %c0_i32_0 = arith.constant 0 : i32
    return %arg0, %c0_i32 : i32, i32
  }
  func.func @transform_6(%arg0: i32) -> (i32, i32) {
    %c0_i32 = arith.constant 0 : i32
    %c0_i32_0 = arith.constant 0 : i32
    return %arg0, %c0_i32 : i32, i32
  }
  func.func @transform_7(%arg0: i32) -> (i32, i32) {
    %c0_i32 = arith.constant 0 : i32
    %c0_i32_0 = arith.constant 0 : i32
    return %arg0, %c0_i32 : i32, i32
  }
}

</mosaic_0001>

<bundles_post_ra>
// kernel: tpu_custom_call.1
= control target key start
LH: loop header
LB: loop body
LE: loop exit
PB: predicated region body
PF: predicated region fallthrough
CT: control target
= control target key end

     0   :  { %14 = vsyncpa [#allocation4], 0  ;;  %s2043_s0 = inlined_call_operand.<no memory space> [shape: f32[1], index: 0, kind: input, shape index: {}]   ;;  %s2044_s1 = inlined_call_operand.hbm [shape: f32[1,3,32,128], index: 1, kind: input, shape index: {}]   ;;  %s2045_s2 = inlined_call_operand.hbm [shape: f32[3,16,128], index: 2, kind: output, shape index: {0}]   ;;  %s2046_s3 = inlined_call_operand.hbm [shape: f32[16,128], index: 3, kind: output, shape index: {1}]   ;;  %s2047_s4 = inlined_call_operand.hbm [shape: f32[16,128], index: 4, kind: output, shape index: {2}]   ;;  %s2048_s5 = inlined_call_operand.hbm [shape: f32[16,128], index: 5, kind: output, shape index: {3}]   ;;  %s2049_s6 = inlined_call_operand.hbm [shape: f32[16,128], index: 6, kind: output, shape index: {4}]   ;;  %s2050_s7 = inlined_call_operand.hbm [shape: f32[16,128], index: 7, kind: output, shape index: {5}]  }
   0x1   :  { %15 = vsyncpa [#allocation5], 0 }
   0x2   :  { %16 = vsyncpa [#allocation8], 0 }
   0x3   :  { %17 = vsyncpa [#allocation11], 0 }
   0x4   :  { %18 = vsyncpa [#allocation14], 0  ;;  %s25_s26 = sshll.u32 %s2044_s1, 4  ;;  %s1408_s27 = smov [#allocation3]   ;;  %s26_s26 = int_to_ptr.hbm [resolvable:$true] %s25_s26 }
   0x5   :  { %s27_s28 = sshll.u32 %s1408_s27, 4  ;;  %s1409_s29 = smov 128   ;;  %s28_s28 = int_to_ptr.vmem [resolvable:$true] %s27_s28 }
   0x6   :  { %s1410_s30 = smov 8  }
   0x7   :  { %33 = dma.hbm_to_vmem [thread:$0]  %s26_s26, 1536, %s28_s28, [#allocation4], %s1409_s29, %s1409_s29, %s1410_s30  }
   0x8   :  { %1398 = dma.done.wait [#allocation4], 1536  }
   0x9   :  { %1399 = vsyncadd [#allocation4], 4294965760  ;;  %v1470_v0 = vld [vmem:[#allocation3 + $0x10] sm:$0xff]  ;;  %v1472_v1 = vld [vmem:[#allocation3] sm:$0xff]  ;;  %s1411_s8 = smov 1   ;;  %s1412_s1 = smov 127   ;;  %v41_v33 = vlaneseq }
   0xa   :  { %82 = vrot.lane.b32.xlu1 %v1470_v0, %s1411_s8  ;;  %78 = vrot.lane.b32.xlu0 %v1472_v1, %s1411_s8  ;;  %v1480_v2 = vld [vmem:[#allocation3 + $0x18] sm:$0xff]  ;;  %v1482_v3 = vld [vmem:[#allocation3 + $0x8] sm:$0xff]  ;;  %s1413_s9 = smov 2   ;;  %s1414_s10 = smov 126   ;;  %v1415_v4 = vmov 0.0   ;;  %v1516_v6 = vld [vmem:[#allocation3 + $0x20] sm:$0xff] }
   0xb   :  { %86 = vrot.lane.b32.xlu2 %v1472_v1, %s1412_s1  ;;  %v1512_v5 = vld [vmem:[#allocation3 + $0x28] sm:$0xff]  ;;  %v1518_v7 = vld [vmem:[#allocation3 + $0x30] sm:$0xff]  ;;  %v1526_v8 = vld [vmem:[#allocation3 + $0x38] sm:$0xff]  ;;  %v76_v31 = vmul.f32 0.40261996, %v1470_v0  ;;  %v1601_v44 = vshrl.u32 %v41_v33, 7 }
   0xc   :  { %v1550_v9 = vld [vmem:[#allocation3 + $0x40] sm:$0xff]  ;;  %v1554_v10 = vld [vmem:[#allocation3 + $0x48] sm:$0xff]  ;;  %v1560_v11 = vld [vmem:[#allocation3 + $0x58] sm:$0xff]  ;;  %v74_v35 = vmul.f32 0.40261996, %v1472_v1  ;;  %s1084_s14 = sshll.u32 %s2046_s3, 4  ;;  %s1085_s14 = int_to_ptr.hbm [resolvable:$true] %s1084_s14 }
   0xd   :  { %v1564_v13 = vld [vmem:[#allocation3 + $0x50] sm:$0xff]  ;;  %v75_v37 = vmul.f32 0.40261996, %v1482_v3  ;;  %v77_v52 = vmul.f32 0.40261996, %v1480_v2  ;;  %vm142_vm0 = vcmp.lt.s32.totalorder %v1601_v44, 1 }
   0xe   :  { %vm151_vm1 = vcmp.lt.s32.totalorder %v1601_v44, 7  ;;  %vm172_vm2 = vcmp.lt.s32.totalorder %v1601_v44, 2  ;;  %vm181_vm3 = vcmp.lt.s32.totalorder %v1601_v44, 6  ;;  %s1418_s15 = smov [#allocation7]   ;;  %s1071_s18 = sshll.u32 %s2045_s2, 4  ;;  %s1072_s18 = int_to_ptr.hbm [resolvable:$true] %s1071_s18 }
   0xf   :  { %s1082_s16 = sshll.u32 %s1418_s15, 4  ;;  %s1419_s19 = smov [#allocation6]   ;;  %s1083_s16 = int_to_ptr.vmem [resolvable:$true] %s1082_s16 }
  0x10   :  { %s1069_s20 = sshll.u32 %s1419_s19, 4  ;;  %s1420_s21 = smov [#allocation9]   ;;  %s1070_s20 = int_to_ptr.vmem [resolvable:$true] %s1069_s20 }
  0x11   :  { %s1095_s22 = sshll.u32 %s1420_s21, 4  ;;  %s1097_s25 = sshll.u32 %s2047_s4, 4  ;;  %s1096_s22 = int_to_ptr.vmem [resolvable:$true] %s1095_s22  ;;  %s1098_s25 = int_to_ptr.hbm [resolvable:$true] %s1097_s25 }
  0x12   :  { %84 = vrot.lane.b32.xlu1 %v1480_v2, %s1411_s8  ;;  %80 = vrot.lane.b32.xlu0 %v1482_v3, %s1411_s8  ;;  %s1421_s2 = smov [#allocation13]   ;;  %s1422_s4 = smov [#allocation10]  }
  0x13   :  { %88 = vrot.lane.b32.xlu2 %v1482_v3, %s1412_s1  ;;  %s1134_s26 = sshll.u32 %s1421_s2, 4  ;;  %s1423_s11 = smov [#allocation12]   ;;  %s1135_s26 = int_to_ptr.vmem [resolvable:$true] %s1134_s26 }
  0x14   :  { %s1121_s12 = sshll.u32 %s1423_s11, 4  ;;  %s1122_s12 = int_to_ptr.vmem [resolvable:$true] %s1121_s12 }
  0x1a   :  { %92 = vrot.lane.b32.xlu1 %v1480_v2, %s1412_s1  ;;  %90 = vrot.lane.b32.xlu0 %v1470_v0, %s1412_s1 }
  0x1b   :  { %106 = vrot.lane.b32.xlu2 %v1472_v1, %s1413_s9 }
  0x22   :  { %110 = vrot.lane.b32.xlu1 %v1470_v0, %s1413_s9  ;;  %108 = vrot.lane.b32.xlu0 %v1482_v3, %s1413_s9 }
  0x23   :  { %112 = vrot.lane.b32.xlu2 %v1480_v2, %s1413_s9 }
  0x2a   :  { %116 = vrot.lane.b32.xlu1 %v1482_v3, %s1414_s10  ;;  %114 = vrot.lane.b32.xlu0 %v1472_v1, %s1414_s10 }
  0x2b   :  { %118 = vrot.lane.b32.xlu2 %v1470_v0, %s1414_s10 }
  0x32   :  { %1189 = vrot.lane.b32.xlu1 %v1415_v4, %s1411_s8  ;;  %120 = vrot.lane.b32.xlu0 %v1480_v2, %s1414_s10 }
  0x33   :  { %363 = vrot.lane.b32.xlu2 %v1512_v5, %s1411_s8 }
  0x3a   :  { %361 = vrot.lane.b32.xlu1 %v1516_v6, %s1411_s8  ;;  %365 = vrot.lane.b32.xlu0 %v1518_v7, %s1411_s8 }
  0x3b   :  { %369 = vrot.lane.b32.xlu2 %v1516_v6, %s1412_s1 }
  0x42   :  { %367 = vrot.lane.b32.xlu1 %v1526_v8, %s1411_s8  ;;  %371 = vrot.lane.b32.xlu0 %v1512_v5, %s1412_s1 }
  0x43   :  { %375 = vrot.lane.b32.xlu2 %v1526_v8, %s1412_s1 }
  0x4a   :  { %373 = vrot.lane.b32.xlu1 %v1518_v7, %s1412_s1  ;;  %389 = vrot.lane.b32.xlu0 %v1516_v6, %s1413_s9 }
  0x4b   :  { %393 = vrot.lane.b32.xlu2 %v1518_v7, %s1413_s9 }
  0x52   :  { %391 = vrot.lane.b32.xlu1 %v1512_v5, %s1413_s9  ;;  %395 = vrot.lane.b32.xlu0 %v1526_v8, %s1413_s9 }
  0x53   :  { %399 = vrot.lane.b32.xlu2 %v1512_v5, %s1414_s10 }
  0x5a   :  { %397 = vrot.lane.b32.xlu1 %v1516_v6, %s1414_s10  ;;  %401 = vrot.lane.b32.xlu0 %v1518_v7, %s1414_s10 }
  0x5b   :  { %641 = vrot.lane.b32.xlu2 %v1550_v9, %s1411_s8 }
  0x62   :  { %403 = vrot.lane.b32.xlu1 %v1526_v8, %s1414_s10  ;;  %643 = vrot.lane.b32.xlu0 %v1554_v10, %s1411_s8 }
  0x63   :  { %647 = vrot.lane.b32.xlu2 %v1560_v11, %s1411_s8 }
  0x65   :  { %v87_v12 = vpop.permute.xlu2 %86 }
  0x6a   :  { %645 = vrot.lane.b32.xlu1 %v1564_v13, %s1411_s8  ;;  %649 = vrot.lane.b32.xlu0 %v1550_v9, %s1412_s1 }
  0x6b   :  { %653 = vrot.lane.b32.xlu2 %v1564_v13, %s1412_s1 }
  0x6d   :  { %v89_v14 = vpop.permute.xlu2 %88 }
  0x72   :  { %651 = vrot.lane.b32.xlu1 %v1554_v10, %s1412_s1  ;;  %655 = vrot.lane.b32.xlu0 %v1560_v11, %s1412_s1 }
  0x73   :  { %671 = vrot.lane.b32.xlu2 %v1554_v10, %s1413_s9 }
  0x75   :  { %v107_v15 = vpop.permute.xlu2 %106 }
  0x7a   :  { %669 = vrot.lane.b32.xlu1 %v1550_v9, %s1413_s9  ;;  %673 = vrot.lane.b32.xlu0 %v1564_v13, %s1413_s9 }
  0x7b   :  { %677 = vrot.lane.b32.xlu2 %v1550_v9, %s1414_s10 }
  0x7c   :  { %v83_v16 = vpop.permute.xlu1 %82  ;;  %v79_v17 = vpop.permute.xlu0 %78 }
  0x7d   :  { %v113_v18 = vpop.permute.xlu2 %112  ;;  %v94_v28 = vadd.f32 %v87_v12, %v79_v17 }
  0x7f   :  { %v98_v36 = vmul.f32 0.24420135, %v94_v28 }
  0x81   :  { %v102_v46 = vadd.f32 %v98_v36, %v74_v35 }
  0x82   :  { %675 = vrot.lane.b32.xlu1 %v1560_v11, %s1413_s9  ;;  %679 = vrot.lane.b32.xlu0 %v1554_v10, %s1414_s10 }
  0x83   :  { %683 = vrot.lane.b32.xlu2 %v1560_v11, %s1414_s10 }
  0x84   :  { %v85_v19 = vpop.permute.xlu1 %84  ;;  %v81_v20 = vpop.permute.xlu0 %80 }
  0x85   :  { %v119_v21 = vpop.permute.xlu2 %118  ;;  %v95_v29 = vadd.f32 %v89_v14, %v81_v20 }
  0x87   :  { %v99_v38 = vmul.f32 0.24420135, %v95_v29 }
  0x89   :  { %v103_v48 = vadd.f32 %v99_v38, %v75_v37 }
  0x8a   :  { %681 = vrot.lane.b32.xlu1 %v1564_v13, %s1414_s10  ;;  %1194 = vrot.lane.b32.xlu0 %v1415_v4, %s1412_s1  ;;  %s1110_s10 = sshll.u32 %s2048_s5, 4  ;;  %s1111_s10 = int_to_ptr.hbm [resolvable:$true] %s1110_s10 }
  0x8c   :  { %v93_v22 = vpop.permute.xlu1 %92  ;;  %v91_v23 = vpop.permute.xlu0 %90 }
  0x8d   :  { %v1594_v24 = vpop.permute.xlu2 %363  ;;  %v96_v27 = vadd.f32 %v91_v23, %v83_v16  ;;  %v97_v47 = vadd.f32 %v93_v22, %v85_v19  ;;  %v1620_v22 = vand.u32 127, %v41_v33 }
  0x8f   :  { %v100_v32 = vmul.f32 0.24420135, %v96_v27  ;;  %v101_v55 = vmul.f32 0.24420135, %v97_v47  ;;  %vm65_vm4 = vcmp.lt.s32.totalorder %v1620_v22, 16 }
  0x91   :  { %v104_v42 = vadd.f32 %v100_v32, %v76_v31  ;;  %v105_v17 = vadd.f32 %v101_v55, %v77_v52 }
  0x94   :  { %v111_v25 = vpop.permute.xlu1 %110  ;;  %v109_v26 = vpop.permute.xlu0 %108 }
  0x95   :  { %v124_v30 = vadd.f32 %v119_v21, %v111_v25  ;;  %v1597_v34 = vpop.permute.xlu2 %369 }
  0x97   :  { %v128_v39 = vmul.f32 0.054488685, %v124_v30 }
  0x99   :  { %v132_v49 = vadd.f32 %v128_v39, %v104_v42 }
  0x9b   :  { %v149_v59 = vrot.slane %v132_v49, 1  ;;  %v179_v2 = vrot.slane %v132_v49, 2  ;;  %v140_v27 = vrot.slane %v132_v49, 7 }
  0x9c   :  { %v117_v40 = vpop.permute.xlu1 %116  ;;  %v115_v41 = vpop.permute.xlu0 %114 }
  0x9d   :  { %v123_v43 = vadd.f32 %v117_v40, %v109_v26  ;;  %v122_v45 = vadd.f32 %v115_v41, %v107_v15  ;;  %v1608_v60 = vpop.permute.xlu2 %375 }
  0x9f   :  { %v127_v50 = vmul.f32 0.054488685, %v123_v43  ;;  %v126_v51 = vmul.f32 0.054488685, %v122_v45  ;;  %v136_v45 = vmul.f32 0.40261996, %v132_v49 }
  0xa1   :  { %v131_v53 = vadd.f32 %v127_v50, %v103_v48  ;;  %v130_v54 = vadd.f32 %v126_v51, %v102_v46 }
  0xa3   :  { %v139_v56 = vrot.slane %v131_v53, 7  ;;  %v138_v57 = vrot.slane %v130_v54, 7  ;;  %v168_v58 = vrot.slane %v130_v54, 6  ;;  %v148_v63 = vrot.slane %v131_v53, 1 }
  0xa4   :  { %v1610_v61 = vpop.permute.xlu1 %1189  ;;  %v121_v62 = vpop.permute.xlu0 %120  ;;  %v169_v0 = vrot.slane %v131_v53, 6  ;;  %v178_v1 = vrot.slane %v131_v53, 2  ;;  %v135_v25 = vmul.f32 0.40261996, %v131_v53 }
  0xa5   :  { %v145_v3 = vsel %vm142_vm0, %v138_v57, %v139_v56  ;;  %v125_v12 = vadd.f32 %v121_v62, %v113_v18  ;;  %v153_v14 = vsel %vm151_vm1, %v148_v63, %v149_v59  ;;  %v170_v18 = vrot.slane %v132_v49, 6  ;;  %v394_v40 = vpop.permute.xlu2 %393 }
  0xa6   :  { %v175_v15 = vsel %vm172_vm2, %v168_v58, %v169_v0  ;;  %v183_v16 = vsel %vm181_vm3, %v178_v1, %v179_v2  ;;  %v157_v20 = vadd.f32 %v153_v14, %v145_v3  ;;  %v144_v36 = vsel %vm142_vm0, %v139_v56, %v140_v27 }
  0xa7   :  { %v129_v19 = vmul.f32 0.054488685, %v125_v12  ;;  %v187_v21 = vadd.f32 %v183_v16, %v175_v15  ;;  %v174_v38 = vsel %vm172_vm2, %v169_v0, %v170_v18  ;;  %v358_v1 = vmul.f32 0.40261996, %v1512_v5 }
  0xa8   :  { %v161_v26 = vmul.f32 0.24420135, %v157_v20  ;;  %v357_v3 = vmul.f32 0.40261996, %v1516_v6  ;;  %v359_v15 = vmul.f32 0.40261996, %v1518_v7 }
  0xa9   :  { %v133_v23 = vadd.f32 %v129_v19, %v105_v17  ;;  %v191_v31 = vmul.f32 0.054488685, %v187_v21  ;;  %v360_v6 = vmul.f32 0.40261996, %v1526_v8 }
  0xaa   :  { %v165_v30 = vadd.f32 %v161_v26, %v135_v25 }
  0xab   :  { %v150_v28 = vrot.slane %v133_v23, 1  ;;  %v180_v29 = vrot.slane %v133_v23, 2 }
  0xac   :  { %v362_v32 = vpop.permute.xlu1 %361  ;;  %v366_v35 = vpop.permute.xlu0 %365  ;;  %v195_v37 = vadd.f32 %v191_v31, %v165_v30 }
  0xad   :  { %v152_v33 = vsel %vm151_vm1, %v149_v59, %v150_v28  ;;  %v182_v39 = vsel %vm181_vm3, %v179_v2, %v180_v29  ;;  %v400_v54 = vpop.permute.xlu2 %399  ;;  %v377_v63 = vadd.f32 %v1597_v34, %v362_v32 }
  0xae   :  { %v158_v41 = vadd.f32 %v152_v33, %v144_v36  ;;  %v188_v42 = vadd.f32 %v182_v39, %v174_v38  ;;  %v1633_v43 = vsel %vm65_vm4, %v195_v37, 0.0 }
  0xaf   :  { %214 = vrot.lane.b32.xlu1 %v1633_v43, %s1412_s1  ;;  %202 = vst [vmem:[#allocation6] sm:$0xff] %v1633_v43  ;;  %206 = vrot.lane.b32.xlu2 %v1633_v43, %s1411_s8  ;;  %v381_v14 = vmul.f32 0.24420135, %v377_v63 }
  0xb0   :  { %v162_v46 = vmul.f32 0.24420135, %v158_v41  ;;  %v192_v48 = vmul.f32 0.054488685, %v188_v42 }
  0xb1   :  { %v385_v26 = vadd.f32 %v381_v14, %v357_v3 }
  0xb2   :  { %v166_v47 = vadd.f32 %v162_v46, %v136_v45 }
  0xb4   :  { %v368_v50 = vpop.permute.xlu1 %367  ;;  %v372_v51 = vpop.permute.xlu0 %371  ;;  %v196_v52 = vadd.f32 %v192_v48, %v166_v47 }
  0xb5   :  { %v1649_v56 = vpop.permute.xlu2 %641  ;;  %v378_v57 = vadd.f32 %v372_v51, %v1594_v24  ;;  %v380_v34 = vadd.f32 %v1608_v60, %v368_v50 }
  0xb6   :  { %v1642_v53 = vsel %vm65_vm4, %v196_v52, 0.0 }
  0xb7   :  { %208 = vrot.lane.b32.xlu0 %v1642_v53, %s1411_s8  ;;  %203 = vst [vmem:[#allocation6 + $0x8] sm:$0xff] %v1642_v53  ;;  %216 = vrot.lane.b32.xlu2 %v1642_v53, %s1412_s1  ;;  %v382_v2 = vmul.f32 0.24420135, %v378_v57  ;;  %v384_v7 = vmul.f32 0.24420135, %v380_v34 }
  0xb9   :  { %v386_v19 = vadd.f32 %v382_v2, %v358_v1  ;;  %v388_v48 = vadd.f32 %v384_v7, %v360_v6 }
  0xbc   :  { %v374_v49 = vpop.permute.xlu1 %373  ;;  %v390_v55 = vpop.permute.xlu0 %389 }
  0xbd   :  { %v379_v0 = vadd.f32 %v374_v49, %v366_v35  ;;  %v1656_v17 = vpop.permute.xlu2 %647 }
  0xbf   :  { %v383_v16 = vmul.f32 0.24420135, %v379_v0 }
  0xc1   :  { %v387_v5 = vadd.f32 %v383_v16, %v359_v15 }
  0xc4   :  { %v392_v58 = vpop.permute.xlu1 %391  ;;  %v396_v59 = vpop.permute.xlu0 %395 }
  0xc5   :  { %v406_v62 = vadd.f32 %v400_v54, %v392_v58  ;;  %v654_v42 = vpop.permute.xlu2 %653 }
  0xc7   :  { %v410_v12 = vmul.f32 0.054488685, %v406_v62 }
  0xc9   :  { %v414_v25 = vadd.f32 %v410_v12, %v386_v19 }
  0xcb   :  { %v422_v30 = vrot.slane %v414_v25, 7  ;;  %v430_v31 = vrot.slane %v414_v25, 1  ;;  %v450_v32 = vrot.slane %v414_v25, 6  ;;  %v458_v60 = vrot.slane %v414_v25, 2 }
  0xcc   :  { %v398_v24 = vpop.permute.xlu1 %397  ;;  %v402_v20 = vpop.permute.xlu0 %401  ;;  %v418_v52 = vmul.f32 0.40261996, %v414_v25 }
  0xcd   :  { %v405_v21 = vadd.f32 %v398_v24, %v390_v55  ;;  %v407_v23 = vadd.f32 %v402_v20, %v394_v40  ;;  %v672_v20 = vpop.permute.xlu2 %671 }
  0xcf   :  { %v409_v27 = vmul.f32 0.054488685, %v405_v21  ;;  %v411_v18 = vmul.f32 0.054488685, %v407_v23 }
  0xd1   :  { %v413_v28 = vadd.f32 %v409_v27, %v385_v26  ;;  %v415_v29 = vadd.f32 %v411_v18, %v387_v5 }
  0xd3   :  { %v421_v35 = vrot.slane %v413_v28, 7  ;;  %v449_v36 = vrot.slane %v413_v28, 6  ;;  %v431_v33 = vrot.slane %v415_v29, 1  ;;  %v459_v37 = vrot.slane %v415_v29, 2 }
  0xd4   :  { %v404_v38 = vpop.permute.xlu1 %403  ;;  %v644_v39 = vpop.permute.xlu0 %643  ;;  %v423_v55 = vrot.slane %v415_v29, 7  ;;  %v451_v57 = vrot.slane %v415_v29, 6  ;;  %v419_v21 = vmul.f32 0.40261996, %v415_v29 }
  0xd5   :  { %v427_v40 = vsel %vm142_vm0, %v421_v35, %v422_v30  ;;  %v408_v41 = vadd.f32 %v404_v38, %v396_v59  ;;  %v434_v8 = vsel %vm151_vm1, %v430_v31, %v431_v33  ;;  %v455_v45 = vsel %vm172_vm2, %v449_v36, %v450_v32  ;;  %v678_v6 = vpop.permute.xlu2 %677 }
  0xd6   :  { %v438_v46 = vadd.f32 %v434_v8, %v427_v40  ;;  %v462_v47 = vsel %vm181_vm3, %v458_v60, %v459_v37  ;;  %v426_v12 = vsel %vm142_vm0, %v422_v30, %v423_v55  ;;  %v454_v14 = vsel %vm172_vm2, %v450_v32, %v451_v57 }
  0xd7   :  { %v412_v50 = vmul.f32 0.054488685, %v408_v41  ;;  %v466_v51 = vadd.f32 %v462_v47, %v455_v45  ;;  %v637_v8 = vmul.f32 0.40261996, %v1550_v9  ;;  %v640_v45 = vmul.f32 0.40261996, %v1560_v11 }
  0xd8   :  { %v442_v54 = vmul.f32 0.24420135, %v438_v46 }
  0xd9   :  { %v416_v49 = vadd.f32 %v412_v50, %v388_v48  ;;  %v470_v59 = vmul.f32 0.054488685, %v466_v51  ;;  %v639_v50 = vmul.f32 0.40261996, %v1564_v13 }
  0xda   :  { %v446_v58 = vadd.f32 %v442_v54, %v418_v52 }
  0xdb   :  { %v432_v62 = vrot.slane %v416_v49, 1  ;;  %v460_v63 = vrot.slane %v416_v49, 2 }
  0xdc   :  { %v646_v0 = vpop.permute.xlu1 %645  ;;  %v650_v1 = vpop.permute.xlu0 %649  ;;  %v474_v2 = vadd.f32 %v470_v59, %v446_v58 }
  0xdd   :  { %v433_v3 = vsel %vm151_vm1, %v431_v33, %v432_v62  ;;  %v461_v15 = vsel %vm181_vm3, %v459_v37, %v460_v63  ;;  %v684_v30 = vpop.permute.xlu2 %683  ;;  %v657_v31 = vadd.f32 %v650_v1, %v1649_v56  ;;  %v638_v37 = vmul.f32 0.40261996, %v1554_v10 }
  0xde   :  { %v1678_v16 = vsel %vm65_vm4, %v474_v2, 0.0  ;;  %v439_v19 = vadd.f32 %v433_v3, %v426_v12  ;;  %v467_v24 = vadd.f32 %v461_v15, %v454_v14  ;;  %v659_v41 = vadd.f32 %v654_v42, %v646_v0 }
  0xdf   :  { %486 = vrot.lane.b32.xlu0 %v1678_v16, %s1411_s8  ;;  %482 = vst [vmem:[#allocation6 + $0x10] sm:$0xff] %v1678_v16  ;;  %494 = vrot.lane.b32.xlu2 %v1678_v16, %s1412_s1 }
  0xe0   :  { %v443_v23 = vmul.f32 0.24420135, %v439_v19  ;;  %v471_v25 = vmul.f32 0.054488685, %v467_v24  ;;  %v663_v10 = vmul.f32 0.24420135, %v659_v41 }
  0xe2   :  { %v447_v34 = vadd.f32 %v443_v23, %v419_v21  ;;  %v667_v11 = vadd.f32 %v663_v10, %v639_v50 }
  0xe4   :  { %v652_v26 = vpop.permute.xlu1 %651  ;;  %v656_v5 = vpop.permute.xlu0 %655  ;;  %v475_v27 = vadd.f32 %v471_v25, %v447_v34 }
  0xe5   :  { %v658_v7 = vadd.f32 %v652_v26, %v644_v39  ;;  %v660_v32 = vadd.f32 %v656_v5, %v1656_v17  ;;  %v661_v39 = vmul.f32 0.24420135, %v657_v31 }
  0xe6   :  { %v1687_v18 = vsel %vm65_vm4, %v475_v27, 0.0 }
  0xe7   :  { %496 = vrot.lane.b32.xlu0 %v1687_v18, %s1412_s1  ;;  %483 = vst [vmem:[#allocation6 + $0x18] sm:$0xff] %v1687_v18  ;;  %488 = vrot.lane.b32.xlu1 %v1687_v18, %s1411_s8  ;;  %v662_v38 = vmul.f32 0.24420135, %v658_v7  ;;  %v664_v56 = vmul.f32 0.24420135, %v660_v32  ;;  %v665_v51 = vadd.f32 %v661_v39, %v637_v8 }
  0xe8   :  { %1204 = vrot.lane.b32.xlu2 %v1415_v4, %s1412_s1 }
  0xe9   :  { %v666_v17 = vadd.f32 %v662_v38, %v638_v37  ;;  %v668_v52 = vadd.f32 %v664_v56, %v640_v45  ;;  %v1191_v56 = vunpack.i.l.bf16 %v1610_v61 }
  0xec   :  { %v670_v28 = vpop.permute.xlu1 %669  ;;  %v674_v29 = vpop.permute.xlu0 %673 }
  0xed   :  { %v685_v60 = vadd.f32 %v678_v6, %v670_v28 }
  0xef   :  { %1199 = vrot.lane.b32.xlu1 %v1415_v4, %s1411_s8  ;;  %1209 = vrot.lane.b32.xlu0 %v1415_v4, %s1411_s8  ;;  %v689_v47 = vmul.f32 0.054488685, %v685_v60 }
  0xf1   :  { %v693_v9 = vadd.f32 %v689_v47, %v665_v51 }
  0xf3   :  { %v701_v63 = vrot.slane %v693_v9, 7  ;;  %v729_v0 = vrot.slane %v693_v9, 6 }
  0xf4   :  { %v676_v35 = vpop.permute.xlu1 %675  ;;  %v680_v36 = vpop.permute.xlu0 %679 }
  0xf5   :  { %v686_v33 = vadd.f32 %v680_v36, %v672_v20  ;;  %v688_v40 = vadd.f32 %v684_v30, %v676_v35 }
  0xf7   :  { %1214 = vrot.lane.b32.xlu0 %v1415_v4, %s1412_s1  ;;  %v690_v46 = vmul.f32 0.054488685, %v686_v33  ;;  %v692_v48 = vmul.f32 0.054488685, %v688_v40 }
  0xf9   :  { %v694_v54 = vadd.f32 %v690_v46, %v666_v17  ;;  %v696_v55 = vadd.f32 %v692_v48, %v668_v52  ;;  %v225_v46 = vmul.f32 2.0, %v1633_v43 }
  0xfb   :  { %v702_v58 = vrot.slane %v694_v54, 7  ;;  %v730_v59 = vrot.slane %v694_v54, 6  ;;  %v712_v1 = vrot.slane %v696_v55, 1  ;;  %v710_v2 = vrot.slane %v694_v54, 1 }
  0xfc   :  { %v682_v42 = vpop.permute.xlu1 %681  ;;  %v738_v12 = vrot.slane %v694_v54, 2  ;;  %v740_v15 = vrot.slane %v696_v55, 2  ;;  %v698_v28 = vmul.f32 0.40261996, %v694_v54  ;;  %v1195_v8 = vpop.permute.xlu0 %1194  ;;  %v226_v55 = vmul.f32 2.0, %v1642_v53 }
  0xfd   :  { %v687_v49 = vadd.f32 %v682_v42, %v674_v29  ;;  %v707_v19 = vsel %vm142_vm0, %v701_v63, %v702_v58  ;;  %v735_v24 = vsel %vm172_vm2, %v729_v0, %v730_v59  ;;  %v1196_v45 = vunpack.i.l.bf16 %v1195_v8 }
  0xff   :  { %v691_v57 = vmul.f32 0.054488685, %v687_v49  ;;  %v232_v17 = vadd.f32 %v1196_v45, %v1191_v56  ;;  %v220_v51 = vsub.f32 %v1191_v56, %v1196_v45 }
 0x101   :  { %v695_v62 = vadd.f32 %v691_v57, %v667_v11  ;;  %v264_v52 = vrot.slane %v232_v17, 7  ;;  %v236_v9 = vrot.slane %v220_v51, 7 }
 0x103   :  { %v711_v3 = vrot.slane %v695_v62, 1  ;;  %v739_v13 = vrot.slane %v695_v62, 2  ;;  %v703_v14 = vrot.slane %v695_v62, 7  ;;  %v731_v20 = vrot.slane %v695_v62, 6 }
 0x104   :  { %v699_v30 = vmul.f32 0.40261996, %v695_v62 }
 0x105   :  { %v714_v21 = vsel %vm151_vm1, %v710_v2, %v711_v3  ;;  %v742_v23 = vsel %vm181_vm3, %v738_v12, %v739_v13  ;;  %v706_v34 = vsel %vm142_vm0, %v702_v58, %v703_v14  ;;  %v713_v25 = vsel %vm151_vm1, %v711_v3, %v712_v1 }
 0x106   :  { %v718_v26 = vadd.f32 %v714_v21, %v707_v19  ;;  %v746_v5 = vadd.f32 %v742_v23, %v735_v24  ;;  %v719_v27 = vadd.f32 %v713_v25, %v706_v34  ;;  %v734_v6 = vsel %vm172_vm2, %v730_v59, %v731_v20 }
 0x107   :  { %v741_v29 = vsel %vm181_vm3, %v739_v13, %v740_v15  ;;  %v1197_v34 = vunpack.i.h.bf16 %v1195_v8  ;;  %v1192_v25 = vunpack.i.h.bf16 %v1610_v61  ;;  %v506_v61 = vmul.f32 2.0, %v1687_v18 }
 0x108   :  { %v722_v7 = vmul.f32 0.24420135, %v718_v26  ;;  %v723_v31 = vmul.f32 0.24420135, %v719_v27  ;;  %v747_v32 = vadd.f32 %v741_v29, %v734_v6  ;;  %v750_v36 = vmul.f32 0.054488685, %v746_v5 }
 0x109   :  { %v207_v39 = vpop.permute.xlu2 %206  ;;  %v505_v26 = vmul.f32 2.0, %v1678_v16  ;;  %v512_v6 = vadd.f32 %v1197_v34, %v1192_v25 }
 0x10a   :  { %v726_v35 = vadd.f32 %v722_v7, %v698_v28  ;;  %v727_v33 = vadd.f32 %v723_v31, %v699_v30  ;;  %v751_v37 = vmul.f32 0.054488685, %v747_v32  ;;  %v229_v47 = vadd.f32 %v225_v46, %v207_v39 }
 0x10b   :  { %v500_v7 = vsub.f32 %v1192_v25, %v1197_v34  ;;  %v544_v31 = vrot.slane %v512_v6, 7 }
 0x10c   :  { %v754_v38 = vadd.f32 %v750_v36, %v726_v35  ;;  %v755_v60 = vadd.f32 %v751_v37, %v727_v33 }
 0x10d   :  { %v516_v36 = vrot.slane %v500_v7, 7 }
 0x10e   :  { %v1726_v40 = vsel %vm65_vm4, %v754_v38, 0.0  ;;  %v1730_v41 = vsel %vm65_vm4, %v755_v60, 0.0 }
 0x10f   :  { %762 = vst [vmem:[#allocation6 + $0x20] sm:$0xff] %v1726_v40  ;;  %766 = vrot.lane.b32.xlu1 %v1726_v40, %s1411_s8  ;;  %768 = vrot.lane.b32.xlu2 %v1730_v41, %s1411_s8 }
 0x110   :  { %763 = vst [vmem:[#allocation6 + $0x28] sm:$0xff] %v1730_v41 }
 0x111   :  { %v217_v11 = vpop.permute.xlu2 %216  ;;  %1077 = dma.vmem_to_hbm [thread:$0]  %s1070_s20, 768, %s1072_s18, [#allocation5], %s1409_s29, %s1409_s29, %s1410_s30  }
 0x117   :  { %774 = vrot.lane.b32.xlu1 %v1726_v40, %s1412_s1  ;;  %776 = vrot.lane.b32.xlu2 %v1730_v41, %s1412_s1 }
 0x121   :  { %v215_v48 = vpop.permute.xlu1 %214 }
 0x122   :  { %v1744_v50 = vsub.f32 %v207_v39, %v215_v48  ;;  %v233_v10 = vadd.f32 %v229_v47, %v215_v48 }
 0x124   :  { %v265_v54 = vrot.slane %v233_v10, 7  ;;  %v237_v42 = vrot.slane %v1744_v50, 7  ;;  %v245_v43 = vmul.f32 2.0, %v1744_v50  ;;  %v253_v63 = vrot.slane %v1744_v50, 1 }
 0x125   :  { %v273_v53 = vrot.slane %v233_v10, 1 }
 0x126   :  { %v270_v49 = vsel %vm142_vm0, %v264_v52, %v265_v54  ;;  %v242_v58 = vsel %vm142_vm0, %v236_v9, %v237_v42 }
 0x127   :  { %v249_v2 = vadd.f32 %v245_v43, %v242_v58 }
 0x129   :  { %v209_v57 = vpop.permute.xlu0 %208 }
 0x12a   :  { %v1755_v59 = vsub.f32 %v209_v57, %v217_v11  ;;  %v230_v62 = vadd.f32 %v226_v55, %v209_v57 }
 0x12c   :  { %v1758_v0 = vadd.f32 %v230_v62, %v217_v11  ;;  %v254_v1 = vrot.slane %v1755_v59, 1  ;;  %v238_v47 = vrot.slane %v1755_v59, 7 }
 0x12e   :  { %v257_v3 = vsel %vm151_vm1, %v253_v63, %v254_v1  ;;  %v266_v12 = vrot.slane %v1758_v0, 7  ;;  %v274_v13 = vrot.slane %v1758_v0, 1  ;;  %v241_v62 = vsel %vm142_vm0, %v237_v42, %v238_v47 }
 0x12f   :  { %v1767_v14 = vadd.f32 %v257_v3, %v249_v2  ;;  %v246_v63 = vmul.f32 2.0, %v1755_v59 }
 0x130   :  { %v1771_v15 = vsel %vm142_vm0, %v265_v54, %v266_v12  ;;  %v277_v19 = vsel %vm151_vm1, %v273_v53, %v274_v13 }
 0x131   :  { %v281_v24 = vsub.f32 %v270_v49, %v277_v19  ;;  %v285_v20 = vmul.f32 %v1767_v14, %v1767_v14 }
 0x133   :  { %v289_v21 = vmul.f32 %v281_v24, %v281_v24 }
 0x135   :  { %v1779_v23 = vadd.f32 %v289_v21, %v285_v20 }
 0x137   :  { %1218 = vrsqrt.f32 %v1779_v23  ;;  %vm315_vm5 = vcmp.eq.f32.partialorder %v1779_v23, inf  ;;  %vm317_vm7 = vcmp.eq.f32.partialorder %v1779_v23, 0.0 }
 0x139   :  { %v495_v5 = vpop.permute.xlu2 %494 }
 0x13d   :  { %v1787_v60 = vpop.eup %1218 }
 0x13e   :  { %v309_v48 = vmul.f32 %v1787_v60, %v1779_v23 }
 0x140   :  { %v310_v20 = vmul.f32 %v1787_v60, %v309_v48 }
 0x142   :  { %v1205_v18 = vpop.permute.xlu2 %1204 }
 0x143   :  { %v1207_v57 = vunpack.i.h.bf16 %v1205_v18  ;;  %v1206_v58 = vunpack.i.l.bf16 %v1205_v18 }
 0x151   :  { %v487_v27 = vpop.permute.xlu0 %486 }
 0x152   :  { %v501_v28 = vsub.f32 %v487_v27, %v495_v5  ;;  %v509_v29 = vadd.f32 %v505_v26, %v487_v27 }
 0x154   :  { %v513_v30 = vadd.f32 %v509_v29, %v495_v5  ;;  %v517_v32 = vrot.slane %v501_v28, 7  ;;  %v525_v37 = vmul.f32 2.0, %v501_v28  ;;  %v533_v56 = vrot.slane %v501_v28, 1 }
 0x156   :  { %v545_v35 = vrot.slane %v513_v30, 7  ;;  %v522_v8 = vsel %vm142_vm0, %v516_v36, %v517_v32  ;;  %v553_v51 = vrot.slane %v513_v30, 1  ;;  %v311_v36 = vmul.f32 0.5, %v310_v20 }
 0x157   :  { %v529_v10 = vadd.f32 %v525_v37, %v522_v8 }
 0x158   :  { %v550_v33 = vsel %vm142_vm0, %v544_v31, %v545_v35  ;;  %v250_v31 = vadd.f32 %v246_v63, %v241_v62 }
 0x159   :  { %v497_v16 = vpop.permute.xlu0 %496  ;;  %v489_v38 = vpop.permute.xlu1 %488 }
 0x15a   :  { %v502_v45 = vsub.f32 %v489_v38, %v497_v16  ;;  %v510_v39 = vadd.f32 %v506_v61, %v489_v38 }
 0x15c   :  { %v514_v46 = vadd.f32 %v510_v39, %v497_v16  ;;  %v534_v17 = vrot.slane %v502_v45, 1  ;;  %v518_v9 = vrot.slane %v502_v45, 7  ;;  %v526_v3 = vmul.f32 2.0, %v502_v45 }
 0x15e   :  { %v537_v52 = vsel %vm151_vm1, %v533_v56, %v534_v17  ;;  %v546_v54 = vrot.slane %v514_v46, 7  ;;  %v554_v49 = vrot.slane %v514_v46, 1  ;;  %v521_v21 = vsel %vm142_vm0, %v517_v32, %v518_v9 }
 0x15f   :  { %v1796_v55 = vadd.f32 %v537_v52, %v529_v10 }
 0x160   :  { %v549_v11 = vsel %vm142_vm0, %v545_v35, %v546_v54  ;;  %v557_v43 = vsel %vm151_vm1, %v553_v51, %v554_v49  ;;  %v530_v35 = vadd.f32 %v526_v3, %v521_v21 }
 0x161   :  { %v561_v2 = vsub.f32 %v550_v33, %v557_v43  ;;  %v1200_v53 = vpop.permute.xlu1 %1199  ;;  %v565_v34 = vmul.f32 %v1796_v55, %v1796_v55  ;;  %v1210_v18 = vpop.permute.xlu0 %1209 }
 0x162   :  { %v1202_v12 = vunpack.i.h.bf16 %v1200_v53  ;;  %v1201_v19 = vunpack.i.l.bf16 %v1200_v53 }
 0x163   :  { %v569_v25 = vmul.f32 %v561_v2, %v561_v2  ;;  %v1812_v50 = vadd.f32 %v561_v2, %v281_v24 }
 0x164   :  { %v503_v26 = vsub.f32 %v1202_v12, %v1207_v57  ;;  %v515_v42 = vadd.f32 %v1207_v57, %v1202_v12  ;;  %v223_v5 = vsub.f32 %v1201_v19, %v1206_v58  ;;  %v235_v27 = vadd.f32 %v1206_v58, %v1201_v19 }
 0x165   :  { %v573_v6 = vadd.f32 %v569_v25, %v565_v34 }
 0x166   :  { %v535_v28 = vrot.slane %v503_v26, 1  ;;  %v555_v29 = vrot.slane %v515_v42, 1  ;;  %v255_v7 = vrot.slane %v223_v5, 1  ;;  %v275_v30 = vrot.slane %v235_v27, 1 }
 0x167   :  { %1220 = vrsqrt.f32 %v573_v6  ;;  %vm595_vm6 = vcmp.eq.f32.partialorder %v573_v6, inf  ;;  %v598_v53 = vand.u32 2147483648, %v573_v6  ;;  %vm597_vm8 = vcmp.eq.f32.partialorder %v573_v6, 0.0 }
 0x168   :  { %v536_v32 = vsel %vm151_vm1, %v534_v17, %v535_v28  ;;  %v556_v24 = vsel %vm151_vm1, %v554_v49, %v555_v29  ;;  %v256_v33 = vsel %vm151_vm1, %v254_v1, %v255_v7  ;;  %v276_v61 = vsel %vm151_vm1, %v274_v13, %v275_v30 }
 0x169   :  { %v1826_v37 = vadd.f32 %v536_v32, %v530_v35  ;;  %v562_v16 = vsub.f32 %v549_v11, %v556_v24  ;;  %v1828_v38 = vadd.f32 %v256_v33, %v250_v31  ;;  %v282_v8 = vsub.f32 %v1771_v15, %v276_v61  ;;  %v769_v62 = vpop.permute.xlu2 %768  ;;  %v1215_v25 = vpop.permute.xlu0 %1214 }
 0x16a   :  { %v312_v17 = vsub.f32 1.5, %v311_v36  ;;  %v786_v27 = vmul.f32 2.0, %v1730_v41  ;;  %v1212_v29 = vunpack.i.h.bf16 %v1210_v18  ;;  %v1211_v7 = vunpack.i.l.bf16 %v1210_v18 }
 0x16b   :  { %v566_v45 = vmul.f32 %v1826_v37, %v1826_v37  ;;  %v570_v39 = vmul.f32 %v562_v16, %v562_v16  ;;  %v286_v59 = vmul.f32 %v1828_v38, %v1828_v38  ;;  %v290_v1 = vmul.f32 %v282_v8, %v282_v8 }
 0x16c   :  { %v1835_v56 = vadd.f32 %v562_v16, %v282_v8  ;;  %v313_v15 = vmul.f32 %v1787_v60, %v312_v17  ;;  %v318_v60 = vand.u32 2147483648, %v1779_v23  ;;  %v1217_v30 = vunpack.i.h.bf16 %v1215_v25 }
 0x16d   :  { %v1221_v0 = vpop.eup %1220  ;;  %v574_v46 = vadd.f32 %v570_v39, %v566_v45  ;;  %v294_v13 = vadd.f32 %v290_v1, %v286_v59  ;;  %v1216_v35 = vunpack.i.l.bf16 %v1215_v25  ;;  %v790_v8 = vadd.f32 %v786_v27, %v769_v62 }
 0x16e   :  { %v589_v47 = vmul.f32 %v1221_v0, %v573_v6  ;;  %v314_v52 = vmul.f32 %v313_v15, %v1779_v23  ;;  %v795_v59 = vadd.f32 %v1217_v30, %v1212_v29  ;;  %v783_v17 = vsub.f32 %v1212_v29, %v1217_v30 }
 0x16f   :  { %1222 = vrsqrt.f32 %v574_v46  ;;  %vm607_vm9 = vcmp.eq.f32.partialorder %v574_v46, inf  ;;  %vm327_vm10 = vcmp.eq.f32.partialorder %v294_v13, inf  ;;  %v330_v32 = vand.u32 2147483648, %v294_v13 }
 0x170   :  { %1224 = vrsqrt.f32 %v294_v13  ;;  %v590_v48 = vmul.f32 %v1221_v0, %v589_v47  ;;  %v316_v63 = vsel %vm315_vm5, %v1779_v23, %v314_v52  ;;  %vm609_vm11 = vcmp.eq.f32.partialorder %v574_v46, 0.0 }
 0x171   :  { %v319_v20 = vsel %vm317_vm7, %v318_v60, %v316_v63  ;;  %v777_v33 = vpop.permute.xlu2 %776  ;;  %vm329_vm12 = vcmp.eq.f32.partialorder %v294_v13, 0.0  ;;  %v780_v45 = vsub.f32 %v1211_v7, %v1216_v35  ;;  %v792_v15 = vadd.f32 %v1216_v35, %v1211_v7 }
 0x172   :  { %v591_v10 = vmul.f32 0.5, %v590_v48  ;;  %v794_v1 = vadd.f32 %v790_v8, %v777_v33  ;;  %v782_v47 = vsub.f32 %v769_v62, %v777_v33  ;;  %v629_v29 = vadd.f32 %v1826_v37, %v1828_v38 }
 0x174   :  { %v592_v54 = vsub.f32 1.5, %v591_v10  ;;  %v796_v10 = vrot.slane %v780_v45, 7 }
 0x175   :  { %v1223_v51 = vpop.eup %1222 }
 0x176   :  { %v1225_v49 = vpop.eup %1224  ;;  %v601_v9 = vmul.f32 %v1223_v51, %v574_v46  ;;  %v593_v43 = vmul.f32 %v1221_v0, %v592_v54  ;;  %v785_v0 = vmul.f32 2.0, %v1726_v40  ;;  %v815_v54 = vrot.slane %v783_v17, 1 }
 0x177   :  { %v321_v11 = vmul.f32 %v1225_v49, %v294_v13  ;;  %v806_v40 = vmul.f32 2.0, %v782_v47 }
 0x178   :  { %v602_v57 = vmul.f32 %v1223_v51, %v601_v9  ;;  %v594_v2 = vmul.f32 %v593_v43, %v573_v6  ;;  %v814_v9 = vrot.slane %v782_v47, 1 }
 0x179   :  { %v322_v58 = vmul.f32 %v1225_v49, %v321_v11  ;;  %v826_v11 = vrot.slane %v794_v1, 7 }
 0x17a   :  { %v603_v3 = vmul.f32 0.5, %v602_v57  ;;  %v596_v12 = vsel %vm595_vm6, %v573_v6, %v594_v2  ;;  %v610_v6 = vand.u32 2147483648, %v574_v46  ;;  %v824_v2 = vrot.slane %v792_v15, 7 }
 0x17b   :  { %v323_v19 = vmul.f32 0.5, %v322_v58  ;;  %v599_v21 = vsel %vm597_vm8, %v598_v53, %v596_v12  ;;  %v816_v25 = vsel %vm151_vm1, %v814_v9, %v815_v54 }
 0x17c   :  { %v604_v34 = vsub.f32 1.5, %v603_v3  ;;  %v1843_v26 = vadd.f32 %v599_v21, %v319_v20 }
 0x17d   :  { %v324_v42 = vsub.f32 1.5, %v323_v19 }
 0x17e   :  { %v605_v5 = vmul.f32 %v1223_v51, %v604_v34  ;;  %v834_v51 = vrot.slane %v794_v1, 1 }
 0x17f   :  { %v325_v28 = vmul.f32 %v1225_v49, %v324_v42  ;;  %v798_v49 = vrot.slane %v782_v47, 7 }
 0x180   :  { %v606_v31 = vmul.f32 %v605_v5, %v574_v46 }
 0x181   :  { %v767_v23 = vpop.permute.xlu1 %766  ;;  %v326_v36 = vmul.f32 %v325_v28, %v294_v13  ;;  %v628_v28 = vadd.f32 %v1796_v55, %v1767_v14 }
 0x182   :  { %v608_v24 = vsel %vm607_vm9, %v574_v46, %v606_v31  ;;  %v789_v48 = vadd.f32 %v785_v0, %v767_v23  ;;  %v835_v46 = vrot.slane %v795_v59, 1  ;;  %v1417_v0 = vmov 4  }
 0x183   :  { %v328_v61 = vsel %vm327_vm10, %v294_v13, %v326_v36  ;;  %v611_v16 = vsel %vm609_vm11, %v610_v6, %v608_v24 }
 0x184   :  { %v331_v41 = vsel %vm329_vm12, %v330_v32, %v328_v61  ;;  %v836_v62 = vsel %vm151_vm1, %v834_v51, %v835_v46 }
 0x185   :  { %v1846_v39 = vadd.f32 %v611_v16, %v331_v41 }
 0x189   :  { %v775_v18 = vpop.permute.xlu1 %774 }
 0x18a   :  { %v781_v52 = vsub.f32 %v767_v23, %v775_v18  ;;  %v793_v13 = vadd.f32 %v789_v48, %v775_v18 }
 0x18c   :  { %v797_v43 = vrot.slane %v781_v52, 7  ;;  %v805_v57 = vmul.f32 2.0, %v781_v52  ;;  %v813_v58 = vrot.slane %v781_v52, 1  ;;  %v825_v63 = vrot.slane %v793_v13, 7 }
 0x18d   :  { %v833_v60 = vrot.slane %v793_v13, 1 }
 0x18e   :  { %v801_v53 = vsel %vm142_vm0, %v797_v43, %v798_v49  ;;  %v802_v3 = vsel %vm142_vm0, %v796_v10, %v797_v43  ;;  %v829_v12 = vsel %vm142_vm0, %v825_v63, %v826_v11  ;;  %v830_v21 = vsel %vm142_vm0, %v824_v2, %v825_v63 }
 0x18f   :  { %v809_v19 = vadd.f32 %v805_v57, %v802_v3  ;;  %v810_v20 = vadd.f32 %v806_v40, %v801_v53  ;;  %v837_v34 = vsel %vm151_vm1, %v833_v60, %v834_v51  ;;  %v817_v42 = vsel %vm151_vm1, %v813_v58, %v814_v9 }
 0x190   :  { %v841_v5 = vsub.f32 %v830_v21, %v837_v34  ;;  %v842_v27 = vsub.f32 %v829_v12, %v836_v62 }
 0x191   :  { %v821_v7 = vadd.f32 %v817_v42, %v809_v19  ;;  %v822_v30 = vadd.f32 %v816_v25, %v810_v20 }
 0x192   :  { %v849_v31 = vmul.f32 %v841_v5, %v841_v5  ;;  %v850_v35 = vmul.f32 %v842_v27, %v842_v27  ;;  %v910_v23 = vadd.f32 %v841_v5, %v1812_v50  ;;  %v911_v36 = vadd.f32 %v842_v27, %v1835_v56 }
 0x193   :  { %v845_v6 = vmul.f32 %v821_v7, %v821_v7  ;;  %v846_v32 = vmul.f32 %v822_v30, %v822_v30  ;;  %v908_v24 = vadd.f32 %v821_v7, %v628_v28  ;;  %v909_v33 = vadd.f32 %v822_v30, %v629_v29 }
 0x194   :  { %v918_v61 = vand.u32 2147483647, %v910_v23  ;;  %v919_v16 = vand.u32 2147483647, %v911_v36  ;;  %v1416_v56 = vmov 3   ;;  %vm930_vm6 = vcmp.ge.f32.partialorder %v910_v23, 0.0 }
 0x195   :  { %v853_v8 = vadd.f32 %v849_v31, %v845_v6  ;;  %v1871_v41 = vadd.f32 %v850_v35, %v846_v32  ;;  %v916_v14 = vand.u32 2147483647, %v908_v24  ;;  %v917_v55 = vand.u32 2147483647, %v909_v33 }
 0x196   :  { %v924_v37 = vmul.f32 0.41421357, %v918_v61  ;;  %v925_v38 = vmul.f32 0.41421357, %v919_v16  ;;  %vm928_vm13 = vcmp.ge.f32.partialorder %v908_v24, 0.0  ;;  %vm929_vm14 = vcmp.ge.f32.partialorder %v909_v33, 0.0 }
 0x197   :  { %1226 = vrsqrt.f32 %v853_v8  ;;  %v920_v45 = vmul.f32 0.41421357, %v916_v14  ;;  %v921_v50 = vmul.f32 0.41421357, %v917_v55  ;;  %v934_v59 = vsel %vm928_vm13, 1, %v1416_v56 }
 0x198   :  { %1228 = vrsqrt.f32 %v1871_v41  ;;  %vm926_vm15 = vcmp.le.f32.partialorder %v916_v14, %v924_v37  ;;  %vm927_vm2 = vcmp.le.f32.partialorder %v917_v55, %v925_v38  ;;  %v935_v1 = vsel %vm929_vm14, 1, %v1416_v56 }
 0x199   :  { %vm922_vm3 = vcmp.le.f32.partialorder %v918_v61, %v920_v45  ;;  %vm923_vm5 = vcmp.le.f32.partialorder %v919_v16, %v921_v50  ;;  %v932_v17 = vsel %vm928_vm13, 0, %v1417_v0  ;;  %v933_v47 = vsel %vm929_vm14, 0, %v1417_v0 }
 0x19a   :  { %v936_v48 = vsel %vm926_vm15, 2, %v934_v59  ;;  %v937_v15 = vsel %vm927_vm2, 2, %v935_v1  ;;  %vm931_vm7 = vcmp.ge.f32.partialorder %v911_v36, 0.0  ;;  %vm875_vm8 = vcmp.eq.f32.partialorder %v853_v8, inf }
 0x19b   :  { %v938_v10 = vsel %vm922_vm3, %v932_v17, %v936_v48  ;;  %v939_v18 = vsel %vm923_vm5, %v933_v47, %v937_v15  ;;  %v878_v25 = vand.u32 2147483648, %v853_v8  ;;  %vm877_vm9 = vcmp.eq.f32.partialorder %v853_v8, 0.0 }
 0x19c   :  { %v940_v46 = vsub.s32 0, %v938_v10  ;;  %v941_v51 = vsub.s32 0, %v939_v18  ;;  %vm887_vm10 = vcmp.eq.f32.partialorder %v1871_v41, inf  ;;  %v890_v27 = vand.u32 2147483648, %v1871_v41 }
 0x19d   :  { %v1227_v52 = vpop.eup %1226  ;;  %vm889_vm11 = vcmp.eq.f32.partialorder %v1871_v41, 0.0  ;;  %v1890_v31 = vstv %s2043_s0  ;;  %v961_v24 = vrot.slane %v1415_v4, 1  ;;  %v954_v61 = vrot.slane %v1415_v4, 7 }
 0x19e   :  { %v1229_v13 = vpop.eup %1228  ;;  %v869_v54 = vmul.f32 %v1227_v52, %v853_v8  ;;  %v942_v49 = vsel %vm930_vm6, %v938_v10, %v940_v46  ;;  %v943_v9 = vsel %vm931_vm7, %v939_v18, %v941_v51 }
 0x19f   :  { %v881_v11 = vmul.f32 %v1229_v13, %v1871_v41  ;;  %v1875_v43 = vadd.s32 4, %v942_v49  ;;  %v1877_v57 = vadd.s32 4, %v943_v9 }
 0x1a0   :  { %v870_v58 = vmul.f32 %v1227_v52, %v869_v54 }
 0x1a1   :  { %v882_v63 = vmul.f32 %v1229_v13, %v881_v11  ;;  %v946_v62 = vcvt.s32.f32 %v1875_v43  ;;  %v947_v53 = vcvt.s32.f32 %v1877_v57 }
 0x1a2   :  { %v871_v2 = vmul.f32 0.5, %v870_v58 }
 0x1a3   :  { %v883_v40 = vmul.f32 0.5, %v882_v63  ;;  %v948_v21 = vmul.f32 45.0, %v946_v62  ;;  %v949_v34 = vmul.f32 45.0, %v947_v53 }
 0x1a4   :  { %v872_v60 = vsub.f32 1.5, %v871_v2 }
 0x1a5   :  { %v884_v3 = vsub.f32 1.5, %v883_v40  ;;  %1048 = vst [vmem:[#allocation9] sm:$0xff] %v948_v21 }
 0x1a6   :  { %v873_v12 = vmul.f32 %v1227_v52, %v872_v60  ;;  %1049 = vst [vmem:[#allocation9 + $0x8] sm:$0xff] %v949_v34 }
 0x1a7   :  { %v885_v19 = vmul.f32 %v1229_v13, %v884_v3 }
 0x1a8   :  { %v874_v20 = vmul.f32 %v873_v12, %v853_v8 }
 0x1a9   :  { %v886_v42 = vmul.f32 %v885_v19, %v1871_v41 }
 0x1aa   :  { %v876_v5 = vsel %vm875_vm8, %v853_v8, %v874_v20 }
 0x1ab   :  { %v879_v28 = vsel %vm877_vm9, %v878_v25, %v876_v5  ;;  %v888_v29 = vsel %vm887_vm10, %v1871_v41, %v886_v42 }
 0x1ac   :  { %v905_v7 = vadd.f32 %v879_v28, %v1843_v26  ;;  %v891_v30 = vsel %vm889_vm11, %v890_v27, %v888_v29 }
 0x1ad   :  { %v906_v35 = vadd.f32 %v891_v30, %v1846_v39 }
 0x1ae   :  { %v1895_v23 = vsel %vm65_vm4, %v905_v7, 0.0 }
 0x1af   :  { %964 = vrot.lane.b32.xlu0 %v1895_v23, %s1412_s1  ;;  %1046 = vst [vmem:[#allocation7] sm:$0xff] %v1895_v23  ;;  %v1902_v26 = vsel %vm65_vm4, %v906_v35, 0.0  ;;  %v959_v36 = vrot.slane %v1895_v23, 1  ;;  %vm1059_vm12 = vcmp.lt.f32.partialorder %v1895_v23, %v1890_v31  ;;  %v955_v16 = vrot.slane %v1895_v23, 7 }
 0x1b0   :  { %966 = vrot.lane.b32.xlu1 %v1902_v26, %s1412_s1  ;;  %1047 = vst [vmem:[#allocation7 + $0x8] sm:$0xff] %v1902_v26  ;;  %v960_v39 = vrot.slane %v1902_v26, 1  ;;  %vm1060_vm13 = vcmp.lt.f32.partialorder %v1902_v26, %v1890_v31  ;;  %v1061_v6 = vsel %vm1059_vm12, 0.0, %v1895_v23  ;;  %v956_v41 = vrot.slane %v1902_v26, 7 }
 0x1b1   :  { %v1062_v22 = vsel %vm1060_vm13, 0.0, %v1902_v26  ;;  %1063 = vst [vmem:[#allocation13] sm:$0xff] %v1061_v6  ;;  %v1940_v8 = vsel %vm142_vm0, %v954_v61, %v955_v16  ;;  %1090 = dma.vmem_to_hbm [thread:$0]  %s1083_s16, 256, %s1085_s14, [#allocation8], %s1409_s29, %s1409_s29, %s1410_s30  }
 0x1b2   :  { %v1917_v32 = vsel %vm151_vm1, %v959_v36, %v960_v39  ;;  %1064 = vst [vmem:[#allocation13 + $0x8] sm:$0xff] %v1062_v22  ;;  %v1928_v33 = vsel %vm151_vm1, %v960_v39, %v961_v24  ;;  %v1950_v4 = vsel %vm142_vm0, %v955_v16, %v956_v41  ;;  %1103 = dma.vmem_to_hbm [thread:$0]  %s1096_s22, 256, %s1098_s25, [#allocation8], %s1409_s29, %s1409_s29, %s1410_s30   ;;  %vm950_vm0 = vcmp.eq.s32.totalorder %v1875_v43, 8 }
 0x1b3   :  { %976 = vrot.lane.b32.xlu2 %v1917_v32, %s1412_s1  ;;  %v952_v38 = vsel %vm950_vm0, 0, %v1875_v43  ;;  %vm951_vm1 = vcmp.eq.s32.totalorder %v1877_v57, 8  ;;  %s1123_s14 = sshll.u32 %s2049_s6, 4  ;;  %s1124_s14 = int_to_ptr.hbm [resolvable:$true] %s1123_s14 }
 0x1b4   :  { %vm968_vm4 = vcmp.eq.s32.totalorder %v952_v38, 0  ;;  %vm972_vm14 = vcmp.eq.s32.totalorder %v952_v38, 4  ;;  %v953_v56 = vsel %vm951_vm1, 0, %v1877_v57  ;;  %vm980_vm15 = vcmp.eq.s32.totalorder %v952_v38, 1 }
 0x1b5   :  { %vm984_vm2 = vcmp.eq.s32.totalorder %v952_v38, 5  ;;  %vm969_vm3 = vcmp.eq.s32.totalorder %v953_v56, 0  ;;  %vm973_vm5 = vcmp.eq.s32.totalorder %v953_v56, 4  ;;  %vm988_vm6 = vcmp.eq.s32.totalorder %v952_v38, 2 }
 0x1b6   :  { %vm992_vm7 = vcmp.eq.s32.totalorder %v952_v38, 6  ;;  %vm1000_vm8 = vcmp.eq.s32.totalorder %v952_v38, 3  ;;  %vm1004_vm9 = vcmp.eq.s32.totalorder %v952_v38, 7  ;;  %vm981_vm10 = vcmp.eq.s32.totalorder %v953_v56, 1 }
 0x1b7   :  { %1008 = vrot.lane.b32.xlu0 %v1895_v23, %s1411_s8  ;;  %vm985_vm11 = vcmp.eq.s32.totalorder %v953_v56, 5  ;;  %vm989_vm12 = vcmp.eq.s32.totalorder %v953_v56, 2  ;;  %vm993_vm13 = vcmp.eq.s32.totalorder %v953_v56, 6  ;;  %vm1001_vm0 = vcmp.eq.s32.totalorder %v953_v56, 3 }
 0x1b8   :  { %1010 = vrot.lane.b32.xlu1 %v1902_v26, %s1411_s8  ;;  %vm1005_vm1 = vcmp.eq.s32.totalorder %v953_v56, 7 }
 0x1bb   :  { %998 = vrot.lane.b32.xlu2 %v1928_v33, %s1411_s8 }
 0x1bf   :  { %978 = vrot.lane.b32.xlu0 %v1928_v33, %s1412_s1 }
 0x1c0   :  { %996 = vrot.lane.b32.xlu1 %v1917_v32, %s1411_s8 }
 0x1c3   :  { %1016 = vrot.lane.b32.xlu2 %v1940_v8, %s1411_s8 }
 0x1c7   :  { %1018 = vrot.lane.b32.xlu0 %v1950_v4, %s1411_s8  ;;  %s1136_s8 = sshll.u32 %s2050_s7, 4  ;;  %s1108_s7 = sshll.u32 %s1422_s4, 4  ;;  %s1137_s8 = int_to_ptr.hbm [resolvable:$true] %s1136_s8  ;;  %s1109_s7 = int_to_ptr.vmem [resolvable:$true] %s1108_s7 }
 0x1c8   :  { %1028 = vrot.lane.b32.xlu1 %v1940_v8, %s1412_s1 }
 0x1c9   :  { %1142 = dma.vmem_to_hbm [thread:$0]  %s1135_s26, 256, %s1137_s8, [#allocation14], %s1409_s29, %s1409_s29, %s1410_s30  }
 0x1cb   :  { %1030 = vrot.lane.b32.xlu2 %v1950_v4, %s1412_s1 }
 0x20d   :  { %v977_v44 = vpop.permute.xlu2 %976 }
 0x215   :  { %v999_v37 = vpop.permute.xlu2 %998 }
 0x21d   :  { %v1017_v47 = vpop.permute.xlu2 %1016 }
 0x221   :  { %v965_v14 = vpop.permute.xlu0 %964 }
 0x222   :  { %v967_v55 = vpop.permute.xlu1 %966  ;;  %v970_v59 = vsel %vm968_vm4, %v965_v14, 0.0  ;;  %v974_v1 = vsel %vm972_vm14, %v965_v14, 0.0 }
 0x223   :  { %v982_v0 = vsel %vm980_vm15, %v977_v44, %v970_v59  ;;  %v986_v17 = vsel %vm984_vm2, %v977_v44, %v974_v1  ;;  %v971_v48 = vsel %vm969_vm3, %v967_v55, 0.0  ;;  %v975_v15 = vsel %vm973_vm5, %v967_v55, 0.0 }
 0x224   :  { %v990_v46 = vsel %vm988_vm6, %v1917_v32, %v982_v0  ;;  %v994_v51 = vsel %vm992_vm7, %v1917_v32, %v986_v17 }
 0x225   :  { %v1031_v34 = vpop.permute.xlu2 %1030 }
 0x229   :  { %v1009_v45 = vpop.permute.xlu0 %1008 }
 0x22a   :  { %v1011_v50 = vpop.permute.xlu1 %1010 }
 0x231   :  { %v979_v10 = vpop.permute.xlu0 %978 }
 0x232   :  { %v997_v18 = vpop.permute.xlu1 %996  ;;  %v983_v52 = vsel %vm981_vm10, %v979_v10, %v971_v48  ;;  %v987_v13 = vsel %vm985_vm11, %v979_v10, %v975_v15 }
 0x233   :  { %v1002_v54 = vsel %vm1000_vm8, %v997_v18, %v990_v46  ;;  %v1006_v49 = vsel %vm1004_vm9, %v997_v18, %v994_v51  ;;  %v991_v9 = vsel %vm989_vm12, %v1928_v33, %v983_v52  ;;  %v995_v11 = vsel %vm993_vm13, %v1928_v33, %v987_v13 }
 0x234   :  { %v1012_v43 = vsel %vm972_vm14, %v1009_v45, %v1002_v54  ;;  %v1014_v57 = vsel %vm968_vm4, %v1009_v45, %v1006_v49  ;;  %v1003_v58 = vsel %vm1001_vm0, %v999_v37, %v991_v9  ;;  %v1007_v63 = vsel %vm1005_vm1, %v999_v37, %v995_v11 }
 0x235   :  { %v1020_v2 = vsel %vm984_vm2, %v1017_v47, %v1012_v43  ;;  %v1022_v40 = vsel %vm980_vm15, %v1017_v47, %v1014_v57  ;;  %v1013_v60 = vsel %vm973_vm5, %v1011_v50, %v1003_v58  ;;  %v1015_v62 = vsel %vm969_vm3, %v1011_v50, %v1007_v63 }
 0x236   :  { %v1024_v12 = vsel %vm992_vm7, %v1940_v8, %v1020_v2  ;;  %v1026_v19 = vsel %vm988_vm6, %v1940_v8, %v1022_v40 }
 0x239   :  { %v1019_v53 = vpop.permute.xlu0 %1018 }
 0x23a   :  { %v1029_v3 = vpop.permute.xlu1 %1028  ;;  %v1021_v20 = vsel %vm985_vm11, %v1019_v53, %v1013_v60  ;;  %v1023_v21 = vsel %vm981_vm10, %v1019_v53, %v1015_v62 }
 0x23b   :  { %v1032_v25 = vsel %vm1004_vm9, %v1029_v3, %v1024_v12  ;;  %v1034_v42 = vsel %vm1000_vm8, %v1029_v3, %v1026_v19  ;;  %v1025_v5 = vsel %vm993_vm13, %v1950_v4, %v1021_v20  ;;  %v1027_v27 = vsel %vm989_vm12, %v1950_v4, %v1023_v21 }
 0x23c   :  { %v1036_v28 = vsub.f32 %v1895_v23, %v1032_v25  ;;  %v1038_v29 = vsub.f32 %v1895_v23, %v1034_v42  ;;  %v1033_v7 = vsel %vm1005_vm1, %v1031_v34, %v1025_v5  ;;  %v1035_v30 = vsel %vm1001_vm0, %v1031_v34, %v1027_v27 }
 0x23d   :  { %v1037_v35 = vsub.f32 %v1902_v26, %v1033_v7  ;;  %v1039_v36 = vsub.f32 %v1902_v26, %v1035_v30 }
 0x23e   :  { %v1040_v39 = vmin.f32 %v1036_v28, %v1038_v29 }
 0x23f   :  { %v1041_v6 = vmin.f32 %v1037_v35, %v1039_v36 }
 0x240   :  { %vm1042_vm4 = vcmp.gt.f32.partialorder %v1040_v39, 0.0 }
 0x241   :  { %v1044_v22 = vsel %vm1042_vm4, %v1895_v23, 0.0  ;;  %vm1043_vm14 = vcmp.gt.f32.partialorder %v1041_v6, 0.0 }
 0x242   :  { %vm1053_vm15 = vcmp.lt.f32.partialorder %v1044_v22, %v1890_v31  ;;  %1050 = vst [vmem:[#allocation10] sm:$0xff] %v1044_v22  ;;  %v1045_v32 = vsel %vm1043_vm14, %v1902_v26, 0.0 }
 0x243   :  { %v1055_v24 = vsel %vm1053_vm15, 0.0, %v1044_v22  ;;  %1051 = vst [vmem:[#allocation10 + $0x8] sm:$0xff] %v1045_v32  ;;  %vm1054_vm2 = vcmp.lt.f32.partialorder %v1045_v32, %v1890_v31 }
 0x244   :  { %1057 = vst [vmem:[#allocation12] sm:$0xff] %v1055_v24  ;;  %1116 = dma.vmem_to_hbm [thread:$0]  %s1109_s7, 256, %s1111_s10, [#allocation11], %s1409_s29, %s1409_s29, %s1410_s30   ;;  %v1056_v23 = vsel %vm1054_vm2, 0.0, %v1045_v32 }
 0x245   :  { %1058 = vst [vmem:[#allocation12 + $0x8] sm:$0xff] %v1056_v23 }
 0x246   :  { %1129 = dma.vmem_to_hbm [thread:$0]  %s1122_s12, 256, %s1124_s14, [#allocation11], %s1409_s29, %s1409_s29, %s1410_s30  }
 0x247   :  { %1400 = dma.done.wait [#allocation5], 768  }
 0x248   :  { %1401 = vsyncadd [#allocation5], 4294966528 }
 0x249   :  { %1402 = dma.done.wait [#allocation8], 512  }
 0x24a   :  { %1403 = vsyncadd [#allocation8], 4294966784 }
 0x24b   :  { %1404 = dma.done.wait [#allocation11], 512  }
 0x24c   :  { %1405 = vsyncadd [#allocation11], 4294966784 }
 0x24d   :  { %1406 = dma.done.wait [#allocation14], 256  }
 0x24e   :  { %1407 = vsyncadd [#allocation14], 4294967040 }
 0x24f   :  { %1167 = vsyncpa [#allocation4], 1 }
 0x250   :  { %1168 = vsyncpa [#allocation5], 1 }
 0x251   :  { %1169 = vsyncpa [#allocation8], 1 }
 0x252   :  { %1170 = vsyncpa [#allocation11], 1 }
 0x253   :  { %1171 = vsyncpa [#allocation14], 1 }

</bundles_post_ra>
